<compile_context>
chip_gen: v7x
topology: tpu7x:2x2x1
jax: 0.10.0
libtpu: 0.0.40
codegen_flags: <defaults>
</compile_context>

<pallas_src>
import functools

import jax
import jax.numpy as jnp
from jax import lax
from jax.experimental import pallas as pl
from jax.experimental.pallas import tpu as pltpu


# ---------------------------------------------------------------------------
# Helpers
# ---------------------------------------------------------------------------
def _heads_per_group(num_heads, head_dim):
    """Number of heads handled per grid step.

    Chosen as the smallest head count whose channel span (heads * head_dim) is
    a multiple of 128 lanes, so every weight block / store is lane aligned and
    unmasked.  If the whole channel dim fits in 128 lanes, one group handles
    everything (full-width blocks == full array dims, so still legal).
    """
    C = num_heads * head_dim
    if C <= 128:
        return num_heads
    for hpg in range(1, num_heads + 1):
        if num_heads % hpg == 0 and (hpg * head_dim) % 128 == 0:
            return hpg
    return num_heads


def _vmem_limit_bytes(N, C, Gw, hpg, out_bytes):
    """Rough working-set estimate (double-buffered blocks + scratch + temps)."""
    f32, bf16 = 4, 2
    buffered = 2 * (N * C * f32            # x block
                    + N * C * out_bytes    # output block
                    + 3 * C * Gw * bf16    # Wq / Wk / Wv column blocks
                    + Gw * C * bf16        # Wproj row block
                    + C * f32)             # bias
    scratch = N * C * (f32 + bf16)         # accumulator + bf16 x copy
    transient = (3 * N * Gw * (f32 + bf16)           # q/k/v group tiles
                 + (hpg + 2) * N * N * f32           # live scores / softmax temps
                 + N * C * f32)                      # projection partial
    est = buffered + scratch + transient
    return int(min(64 << 20, max(32 << 20, 2 * est)))


# ---------------------------------------------------------------------------
# Fused kernel: per-group QKV projection -> per-head softmax attention ->
# accumulated output projection.  grid = (batch, head_group).
# ---------------------------------------------------------------------------
def _fused_attention_kernel(x_ref, wq_ref, wk_ref, wv_ref, wp_ref, bp_ref,
                            o_ref, xb_ref, acc_ref, *, heads_per_group,
                            head_dim):
    # x_ref:   (1, N, C)  f32      (same block for every group of this batch row)
    # wq/wk/wv:(C, Gw)    bf16     column block of this head group (scale folded
    #                              into wq on the host)
    # wp_ref:  (Gw, C)    bf16     row block of the output projection
    # bp_ref:  (1, C)     f32
    # o_ref:   (1, N, C)
    # xb_ref:  (N, C)     bf16 scratch (x cast once per batch row)
    # acc_ref: (N, C)     f32  scratch (output-projection accumulator)
    g = pl.program_id(1)
    last_g = pl.num_programs(1) - 1

    @pl.when(g == 0)
    def _init():
        xb_ref[...] = x_ref[0].astype(xb_ref.dtype)
        acc_ref[...] = jnp.zeros_like(acc_ref)

    xb = xb_ref[...]                                                  # (N, C) bf16

    # Column block of the QKV projection for this head group.
    # Contraction stays full width (K = C); f32 accumulation, bf16 result.
    q_g = jnp.dot(xb, wq_ref[...],
                  preferred_element_type=jnp.float32).astype(jnp.bfloat16)
    k_g = jnp.dot(xb, wk_ref[...],
                  preferred_element_type=jnp.float32).astype(jnp.bfloat16)
    v_g = jnp.dot(xb, wv_ref[...],
                  preferred_element_type=jnp.float32).astype(jnp.bfloat16)

    # Small static loop over the heads of this group (<= 128 // head_dim).
    head_outs = []
    for i in range(heads_per_group):
        lo = i * head_dim
        hi = lo + head_dim
        q_h = q_g[:, lo:hi]                                           # (N, Dh)
        k_h = k_g[:, lo:hi]
        v_h = v_g[:, lo:hi]

        # q @ k^T without materializing a transpose: contract both on dim 1.
        s = lax.dot_general(q_h, k_h, (((1,), (1,)), ((), ())),
                            preferred_element_type=jnp.float32)       # (N, N) f32
        s = s - jnp.max(s, axis=-1, keepdims=True)
        p = jnp.exp(s)
        # Normalization via the EUP approximate reciprocal (softmax math in f32).
        # TODO(synk): use approx=False if exact parity with PyTorch is required.
        p = p * pl.reciprocal(jnp.sum(p, axis=-1, keepdims=True), approx=True)
        head_outs.append(jnp.dot(p.astype(jnp.bfloat16), v_h,
                                 preferred_element_type=jnp.float32)) # (N, Dh)

    y_g = head_outs[0] if len(head_outs) == 1 else jnp.concatenate(head_outs,
                                                                   axis=-1)

    # Accumulate this group's contribution to the output projection; the
    # matching Wproj row block [g*Gw, (g+1)*Gw) arrives via its BlockSpec.
    acc_ref[...] += jnp.dot(y_g.astype(jnp.bfloat16), wp_ref[...],
                            preferred_element_type=jnp.float32)       # (N, C)

    @pl.when(g == last_g)
    def _finalize():
        o_ref[0] = (acc_ref[...] + bp_ref[...]).astype(o_ref.dtype)


def attention_forward(x, params, num_heads, heads_per_group=None):
    """Fused ViT Attention forward. x: (B, N, C) f32, params from prepare_params."""
    B, N, C = x.shape
    assert C % num_heads == 0, "dim should be divisible by num_heads"
    head_dim = C // num_heads
    if heads_per_group is None:
        heads_per_group = _heads_per_group(num_heads, head_dim)
    assert num_heads % heads_per_group == 0
    Gw = heads_per_group * head_dim           # channel span of one head group
    num_groups = num_heads // heads_per_group

    kernel = functools.partial(_fused_attention_kernel,
                               heads_per_group=heads_per_group,
                               head_dim=head_dim)

    return pl.pallas_call(
        kernel,
        out_shape=jax.ShapeDtypeStruct((B, N, C), x.dtype),
        grid=(B, num_groups),
        in_specs=[
            pl.BlockSpec((1, N, C), lambda b, g: (b, 0, 0)),   # x[b], reused over g
            pl.BlockSpec((C, Gw), lambda b, g: (0, g)),        # Wq cols of group g
            pl.BlockSpec((C, Gw), lambda b, g: (0, g)),        # Wk cols of group g
            pl.BlockSpec((C, Gw), lambda b, g: (0, g)),        # Wv cols of group g
            pl.BlockSpec((Gw, C), lambda b, g: (g, 0)),        # Wproj rows of group g
            pl.BlockSpec((1, C), lambda b, g: (0, 0)),         # bias (resident)
        ],
        out_specs=pl.BlockSpec((1, N, C), lambda b, g: (b, 0, 0)),
        scratch_shapes=[
            pltpu.VMEM((N, C), jnp.bfloat16),   # bf16 x, cast once per batch row
            pltpu.VMEM((N, C), jnp.float32),    # output-projection accumulator
        ],
        compiler_params=pltpu.CompilerParams(
            dimension_semantics=("parallel", "arbitrary"),
            vmem_limit_bytes=_vmem_limit_bytes(
                N, C, Gw, heads_per_group, jnp.dtype(x.dtype).itemsize)),
    )(x, params["w_q"], params["w_k"], params["w_v"],
      params["w_proj"], params["b_proj"])


# ---------------------------------------------------------------------------
# Host-side, one-time parameter preparation
# ---------------------------------------------------------------------------
def prepare_params(params, num_heads):
    """Split w_qkv into q/k/v column blocks (PyTorch layout [q|k|v], head-major),
    fold the 1/sqrt(head_dim) softmax scale into the q weights, and cast the
    matmul weights to bf16 (MXU operands).  Bias stays f32."""
    w_qkv = params["w_qkv"]                    # (C, 3C), already x @ W layout
    C = w_qkv.shape[0]
    head_dim = C // num_heads
    scale = head_dim ** (-0.5)
    return {
        "w_q": (w_qkv[:, :C] * scale).astype(jnp.bfloat16),
        "w_k": w_qkv[:, C:2 * C].astype(jnp.bfloat16),
        "w_v": w_qkv[:, 2 * C:].astype(jnp.bfloat16),
        "w_proj": params["w_proj"].astype(jnp.bfloat16),
        "b_proj": params["b_proj"].reshape(1, C).astype(jnp.float32),
    }


# ---------------------------------------------------------------------------
# Pure-JAX reference (true module semantics, f32 weights) for the check
# ---------------------------------------------------------------------------
def attention_reference(x, params, num_heads):
    B, N, C = x.shape
    head_dim = C // num_heads
    scale = head_dim ** (-0.5)
    qkv = x @ params["w_qkv"]                  # qkv_bias=False
    qkv = qkv.reshape(B, N, 3, num_heads, head_dim).transpose(2, 0, 3, 1, 4)
    q, k, v = qkv[0], qkv[1], qkv[2]
    attn = jax.nn.softmax((q * scale) @ jnp.swapaxes(k, -2, -1), axis=-1)
    y = (attn @ v).transpose(0, 2, 1, 3).reshape(B, N, C)
    return y @ params["w_proj"] + params["b_proj"]


if __name__ == "__main__":
    root = jax.random.PRNGKey(0)

    def run_case(case_key, B, N, C, H):
        kx, kq, kp, kb = jax.random.split(case_key, 4)
        x = jax.random.normal(kx, (B, N, C), dtype=jnp.float32)
        # PyTorch nn.Linear stores weight (out, in) and computes x @ W^T + b;
        # here we store the already-transposed (in, out) weights.
        params_f32 = {
            "w_qkv": jax.random.normal(kq, (C, 3 * C), jnp.float32) * 0.05,
            "w_proj": jax.random.normal(kp, (C, C), jnp.float32) * 0.05,
            "b_proj": jax.random.normal(kb, (C,), jnp.float32) * 0.05,
        }
        out = attention_forward(x, prepare_params(params_f32, H), num_heads=H)
        out = jax.block_until_ready(out)
        ref = attention_reference(x, params_f32, H)
        assert out.shape == (B, N, C)
        # Tolerance covers bf16 MXU operands + the EUP approximate reciprocal.
        err = float(jnp.max(jnp.abs(out - ref)))
        assert jnp.allclose(out, ref, atol=3e-2, rtol=3e-2), (
            f"mismatch vs reference (max abs err {err:.4e})")

    k1, k2 = jax.random.split(root, 2)
    # dim=32, num_heads=8 (module-default toy size) -> single head group.
    run_case(k1, B=2, N=8, C=32, H=8)
    # dim=256, num_heads=8 -> exercises the multi-group grid path (Gw=128, 2 groups).
    run_case(k2, B=2, N=16, C=256, H=8)

    print("KERNEL_OK")
</pallas_src>

<mosaic_0001>
module attributes {stable_mosaic.version = 11 : i64} {
  func.func @_fused_attention_kernel(%arg0: i32, %arg1: i32, %arg2: memref<1x8x32xf32, #tpu.memory_space<vmem>>, %arg3: memref<32x32xbf16, #tpu.memory_space<vmem>>, %arg4: memref<32x32xbf16, #tpu.memory_space<vmem>>, %arg5: memref<32x32xbf16, #tpu.memory_space<vmem>>, %arg6: memref<32x32xbf16, #tpu.memory_space<vmem>>, %arg7: memref<1x32xf32, #tpu.memory_space<vmem>>, %arg8: memref<1x8x32xf32, #tpu.memory_space<vmem>>, %arg9: memref<8x32xbf16, #tpu.memory_space<vmem>>, %arg10: memref<8x32xf32, #tpu.memory_space<vmem>>) attributes {dimension_semantics = [#tpu.dimension_semantics<parallel>, #tpu.dimension_semantics<arbitrary>], iteration_bounds = array<i64: 2, 1>, scalar_prefetch = 0 : i64, scratch_operands = 2 : i64, tpu.core_type = #tpu.core_type<tc>, window_params = [{transform_indices = @transform_0, window_bounds = array<i64: 1, 8, 32>}, {transform_indices = @transform_1, window_bounds = array<i64: 32, 32>}, {transform_indices = @transform_2, window_bounds = array<i64: 32, 32>}, {transform_indices = @transform_3, window_bounds = array<i64: 32, 32>}, {transform_indices = @transform_4, window_bounds = array<i64: 32, 32>}, {pipeline_mode = #tpu.pipeline_mode<synchronous>, transform_indices = @transform_5, window_bounds = array<i64: 1, 32>}, {transform_indices = @transform_6, window_bounds = array<i64: 1, 8, 32>}]} {
    %c0_i32 = arith.constant 0 : i32
    %0 = arith.cmpi eq, %arg1, %c0_i32 : i32
    %1 = arith.extui %0 : i1 to i32
    %c0_i32_0 = arith.constant 0 : i32
    %2 = arith.cmpi ne, %1, %c0_i32_0 : i32
    scf.if %2 {
      %c0_51 = arith.constant 0 : index
      %c0_52 = arith.constant 0 : index
      %c0_53 = arith.constant 0 : index
      %151 = vector.load %arg2[%c0_51, %c0_52, %c0_53] : memref<1x8x32xf32, #tpu.memory_space<vmem>>, vector<1x8x32xf32>
      %152 = vector.shape_cast %151 : vector<1x8x32xf32> to vector<8x32xf32>
      %153 = arith.truncf %152 : vector<8x32xf32> to vector<8x32xbf16>
      %c0_54 = arith.constant 0 : index
      %c0_55 = arith.constant 0 : index
      %154 = vector.load %arg9[%c0_54, %c0_55] : memref<8x32xbf16, #tpu.memory_space<vmem>>, vector<8x32xbf16>
      tpu.vector_store %arg9[%c0_54, %c0_55], %153 {strides = array<i32>} : memref<8x32xbf16, #tpu.memory_space<vmem>>, vector<8x32xbf16>,
      %cst_56 = arith.constant 0.000000e+00 : f32
      %155 = vector.broadcast %cst_56 : f32 to vector<8x32xf32>
      %c0_57 = arith.constant 0 : index
      %c0_58 = arith.constant 0 : index
      %156 = vector.load %arg10[%c0_57, %c0_58] : memref<8x32xf32, #tpu.memory_space<vmem>>, vector<8x32xf32>
      tpu.vector_store %arg10[%c0_57, %c0_58], %155 {strides = array<i32>} : memref<8x32xf32, #tpu.memory_space<vmem>>, vector<8x32xf32>,
    } else {
    }
    %c0 = arith.constant 0 : index
    %c0_1 = arith.constant 0 : index
    %3 = vector.load %arg9[%c0, %c0_1] : memref<8x32xbf16, #tpu.memory_space<vmem>>, vector<8x32xbf16>
    %c0_2 = arith.constant 0 : index
    %c0_3 = arith.constant 0 : index
    %4 = vector.load %arg3[%c0_2, %c0_3] : memref<32x32xbf16, #tpu.memory_space<vmem>>, vector<32x32xbf16>
    %cst = arith.constant dense<0.000000e+00> : vector<8x32xf32>
    %5 = tpu.matmul %3, %4, %cst {dimension_numbers = #tpu.dot_dimension_numbers<[1], [0], [0], [1], [0, 0, 1, 1], [], []>} : vector<8x32xbf16>, vector<32x32xbf16>, vector<8x32xf32> -> vector<8x32xf32>
    %6 = arith.truncf %5 : vector<8x32xf32> to vector<8x32xbf16>
    %c0_4 = arith.constant 0 : index
    %c0_5 = arith.constant 0 : index
    %7 = vector.load %arg4[%c0_4, %c0_5] : memref<32x32xbf16, #tpu.memory_space<vmem>>, vector<32x32xbf16>
    %cst_6 = arith.constant dense<0.000000e+00> : vector<8x32xf32>
    %8 = tpu.matmul %3, %7, %cst_6 {dimension_numbers = #tpu.dot_dimension_numbers<[1], [0], [0], [1], [0, 0, 1, 1], [], []>} : vector<8x32xbf16>, vector<32x32xbf16>, vector<8x32xf32> -> vector<8x32xf32>
    %9 = arith.truncf %8 : vector<8x32xf32> to vector<8x32xbf16>
    %c0_7 = arith.constant 0 : index
    %c0_8 = arith.constant 0 : index
    %10 = vector.load %arg5[%c0_7, %c0_8] : memref<32x32xbf16, #tpu.memory_space<vmem>>, vector<32x32xbf16>
    %cst_9 = arith.constant dense<0.000000e+00> : vector<8x32xf32>
    %11 = tpu.matmul %3, %10, %cst_9 {dimension_numbers = #tpu.dot_dimension_numbers<[1], [0], [0], [1], [0, 0, 1, 1], [], []>} : vector<8x32xbf16>, vector<32x32xbf16>, vector<8x32xf32> -> vector<8x32xf32>
    %12 = arith.truncf %11 : vector<8x32xf32> to vector<8x32xbf16>
    %13 = vector.extract_strided_slice %6 {offsets = [0, 0], sizes = [8, 4], strides = [1, 1]} : vector<8x32xbf16> to vector<8x4xbf16>
    %14 = vector.extract_strided_slice %9 {offsets = [0, 0], sizes = [8, 4], strides = [1, 1]} : vector<8x32xbf16> to vector<8x4xbf16>
    %15 = vector.extract_strided_slice %12 {offsets = [0, 0], sizes = [8, 4], strides = [1, 1]} : vector<8x32xbf16> to vector<8x4xbf16>
    %cst_10 = arith.constant dense<0.000000e+00> : vector<8x8xf32>
    %16 = tpu.matmul %13, %14, %cst_10 {dimension_numbers = #tpu.dot_dimension_numbers<[1], [1], [0], [0], [0, 0, 1, 0], [], []>} : vector<8x4xbf16>, vector<8x4xbf16>, vector<8x8xf32> -> vector<8x8xf32>
    %cst_11 = arith.constant dense<0xFF800000> : vector<8xf32>
    %17 = vector.multi_reduction <maximumf>, %16, %cst_11 [1] : vector<8x8xf32> to vector<8xf32>
    %18 = vector.shape_cast %17 : vector<8xf32> to vector<8x1xf32>
    %19 = vector.broadcast %18 : vector<8x1xf32> to vector<8x8xf32>
    %20 = arith.subf %16, %19 : vector<8x8xf32>
    %21 = math.exp %20 : vector<8x8xf32>
    %cst_12 = arith.constant dense<0.000000e+00> : vector<8xf32>
    %22 = vector.multi_reduction <add>, %21, %cst_12 [1] : vector<8x8xf32> to vector<8xf32>
    %23 = vector.shape_cast %22 : vector<8xf32> to vector<8x1xf32>
    %24 = tpu.reciprocal %23 {approx = true} : vector<8x1xf32> -> vector<8x1xf32>
    %25 = vector.broadcast %24 : vector<8x1xf32> to vector<8x8xf32>
    %26 = arith.mulf %21, %25 : vector<8x8xf32>
    %27 = arith.truncf %26 : vector<8x8xf32> to vector<8x8xbf16>
    %cst_13 = arith.constant dense<0.000000e+00> : vector<8x4xf32>
    %28 = tpu.matmul %27, %15, %cst_13 {dimension_numbers = #tpu.dot_dimension_numbers<[1], [0], [0], [1], [0, 0, 1, 1], [], []>} : vector<8x8xbf16>, vector<8x4xbf16>, vector<8x4xf32> -> vector<8x4xf32>
    %29 = vector.extract_strided_slice %6 {offsets = [0, 4], sizes = [8, 4], strides = [1, 1]} : vector<8x32xbf16> to vector<8x4xbf16>
    %30 = vector.extract_strided_slice %9 {offsets = [0, 4], sizes = [8, 4], strides = [1, 1]} : vector<8x32xbf16> to vector<8x4xbf16>
    %31 = vector.extract_strided_slice %12 {offsets = [0, 4], sizes = [8, 4], strides = [1, 1]} : vector<8x32xbf16> to vector<8x4xbf16>
    %cst_14 = arith.constant dense<0.000000e+00> : vector<8x8xf32>
    %32 = tpu.matmul %29, %30, %cst_14 {dimension_numbers = #tpu.dot_dimension_numbers<[1], [1], [0], [0], [0, 0, 1, 0], [], []>} : vector<8x4xbf16>, vector<8x4xbf16>, vector<8x8xf32> -> vector<8x8xf32>
    %cst_15 = arith.constant dense<0xFF800000> : vector<8xf32>
    %33 = vector.multi_reduction <maximumf>, %32, %cst_15 [1] : vector<8x8xf32> to vector<8xf32>
    %34 = vector.shape_cast %33 : vector<8xf32> to vector<8x1xf32>
    %35 = vector.broadcast %34 : vector<8x1xf32> to vector<8x8xf32>
    %36 = arith.subf %32, %35 : vector<8x8xf32>
    %37 = math.exp %36 : vector<8x8xf32>
    %cst_16 = arith.constant dense<0.000000e+00> : vector<8xf32>
    %38 = vector.multi_reduction <add>, %37, %cst_16 [1] : vector<8x8xf32> to vector<8xf32>
    %39 = vector.shape_cast %38 : vector<8xf32> to vector<8x1xf32>
    %40 = tpu.reciprocal %39 {approx = true} : vector<8x1xf32> -> vector<8x1xf32>
    %41 = vector.broadcast %40 : vector<8x1xf32> to vector<8x8xf32>
    %42 = arith.mulf %37, %41 : vector<8x8xf32>
    %43 = arith.truncf %42 : vector<8x8xf32> to vector<8x8xbf16>
    %cst_17 = arith.constant dense<0.000000e+00> : vector<8x4xf32>
    %44 = tpu.matmul %43, %31, %cst_17 {dimension_numbers = #tpu.dot_dimension_numbers<[1], [0], [0], [1], [0, 0, 1, 1], [], []>} : vector<8x8xbf16>, vector<8x4xbf16>, vector<8x4xf32> -> vector<8x4xf32>
    %45 = vector.extract_strided_slice %6 {offsets = [0, 8], sizes = [8, 4], strides = [1, 1]} : vector<8x32xbf16> to vector<8x4xbf16>
    %46 = vector.extract_strided_slice %9 {offsets = [0, 8], sizes = [8, 4], strides = [1, 1]} : vector<8x32xbf16> to vector<8x4xbf16>
    %47 = vector.extract_strided_slice %12 {offsets = [0, 8], sizes = [8, 4], strides = [1, 1]} : vector<8x32xbf16> to vector<8x4xbf16>
    %cst_18 = arith.constant dense<0.000000e+00> : vector<8x8xf32>
    %48 = tpu.matmul %45, %46, %cst_18 {dimension_numbers = #tpu.dot_dimension_numbers<[1], [1], [0], [0], [0, 0, 1, 0], [], []>} : vector<8x4xbf16>, vector<8x4xbf16>, vector<8x8xf32> -> vector<8x8xf32>
    %cst_19 = arith.constant dense<0xFF800000> : vector<8xf32>
    %49 = vector.multi_reduction <maximumf>, %48, %cst_19 [1] : vector<8x8xf32> to vector<8xf32>
    %50 = vector.shape_cast %49 : vector<8xf32> to vector<8x1xf32>
    %51 = vector.broadcast %50 : vector<8x1xf32> to vector<8x8xf32>
    %52 = arith.subf %48, %51 : vector<8x8xf32>
    %53 = math.exp %52 : vector<8x8xf32>
    %cst_20 = arith.constant dense<0.000000e+00> : vector<8xf32>
    %54 = vector.multi_reduction <add>, %53, %cst_20 [1] : vector<8x8xf32> to vector<8xf32>
    %55 = vector.shape_cast %54 : vector<8xf32> to vector<8x1xf32>
    %56 = tpu.reciprocal %55 {approx = true} : vector<8x1xf32> -> vector<8x1xf32>
    %57 = vector.broadcast %56 : vector<8x1xf32> to vector<8x8xf32>
    %58 = arith.mulf %53, %57 : vector<8x8xf32>
    %59 = arith.truncf %58 : vector<8x8xf32> to vector<8x8xbf16>
    %cst_21 = arith.constant dense<0.000000e+00> : vector<8x4xf32>
    %60 = tpu.matmul %59, %47, %cst_21 {dimension_numbers = #tpu.dot_dimension_numbers<[1], [0], [0], [1], [0, 0, 1, 1], [], []>} : vector<8x8xbf16>, vector<8x4xbf16>, vector<8x4xf32> -> vector<8x4xf32>
    %61 = vector.extract_strided_slice %6 {offsets = [0, 12], sizes = [8, 4], strides = [1, 1]} : vector<8x32xbf16> to vector<8x4xbf16>
    %62 = vector.extract_strided_slice %9 {offsets = [0, 12], sizes = [8, 4], strides = [1, 1]} : vector<8x32xbf16> to vector<8x4xbf16>
    %63 = vector.extract_strided_slice %12 {offsets = [0, 12], sizes = [8, 4], strides = [1, 1]} : vector<8x32xbf16> to vector<8x4xbf16>
    %cst_22 = arith.constant dense<0.000000e+00> : vector<8x8xf32>
    %64 = tpu.matmul %61, %62, %cst_22 {dimension_numbers = #tpu.dot_dimension_numbers<[1], [1], [0], [0], [0, 0, 1, 0], [], []>} : vector<8x4xbf16>, vector<8x4xbf16>, vector<8x8xf32> -> vector<8x8xf32>
    %cst_23 = arith.constant dense<0xFF800000> : vector<8xf32>
    %65 = vector.multi_reduction <maximumf>, %64, %cst_23 [1] : vector<8x8xf32> to vector<8xf32>
    %66 = vector.shape_cast %65 : vector<8xf32> to vector<8x1xf32>
    %67 = vector.broadcast %66 : vector<8x1xf32> to vector<8x8xf32>
    %68 = arith.subf %64, %67 : vector<8x8xf32>
    %69 = math.exp %68 : vector<8x8xf32>
    %cst_24 = arith.constant dense<0.000000e+00> : vector<8xf32>
    %70 = vector.multi_reduction <add>, %69, %cst_24 [1] : vector<8x8xf32> to vector<8xf32>
    %71 = vector.shape_cast %70 : vector<8xf32> to vector<8x1xf32>
    %72 = tpu.reciprocal %71 {approx = true} : vector<8x1xf32> -> vector<8x1xf32>
    %73 = vector.broadcast %72 : vector<8x1xf32> to vector<8x8xf32>
    %74 = arith.mulf %69, %73 : vector<8x8xf32>
    %75 = arith.truncf %74 : vector<8x8xf32> to vector<8x8xbf16>
    %cst_25 = arith.constant dense<0.000000e+00> : vector<8x4xf32>
    %76 = tpu.matmul %75, %63, %cst_25 {dimension_numbers = #tpu.dot_dimension_numbers<[1], [0], [0], [1], [0, 0, 1, 1], [], []>} : vector<8x8xbf16>, vector<8x4xbf16>, vector<8x4xf32> -> vector<8x4xf32>
    %77 = vector.extract_strided_slice %6 {offsets = [0, 16], sizes = [8, 4], strides = [1, 1]} : vector<8x32xbf16> to vector<8x4xbf16>
    %78 = vector.extract_strided_slice %9 {offsets = [0, 16], sizes = [8, 4], strides = [1, 1]} : vector<8x32xbf16> to vector<8x4xbf16>
    %79 = vector.extract_strided_slice %12 {offsets = [0, 16], sizes = [8, 4], strides = [1, 1]} : vector<8x32xbf16> to vector<8x4xbf16>
    %cst_26 = arith.constant dense<0.000000e+00> : vector<8x8xf32>
    %80 = tpu.matmul %77, %78, %cst_26 {dimension_numbers = #tpu.dot_dimension_numbers<[1], [1], [0], [0], [0, 0, 1, 0], [], []>} : vector<8x4xbf16>, vector<8x4xbf16>, vector<8x8xf32> -> vector<8x8xf32>
    %cst_27 = arith.constant dense<0xFF800000> : vector<8xf32>
    %81 = vector.multi_reduction <maximumf>, %80, %cst_27 [1] : vector<8x8xf32> to vector<8xf32>
    %82 = vector.shape_cast %81 : vector<8xf32> to vector<8x1xf32>
    %83 = vector.broadcast %82 : vector<8x1xf32> to vector<8x8xf32>
    %84 = arith.subf %80, %83 : vector<8x8xf32>
    %85 = math.exp %84 : vector<8x8xf32>
    %cst_28 = arith.constant dense<0.000000e+00> : vector<8xf32>
    %86 = vector.multi_reduction <add>, %85, %cst_28 [1] : vector<8x8xf32> to vector<8xf32>
    %87 = vector.shape_cast %86 : vector<8xf32> to vector<8x1xf32>
    %88 = tpu.reciprocal %87 {approx = true} : vector<8x1xf32> -> vector<8x1xf32>
    %89 = vector.broadcast %88 : vector<8x1xf32> to vector<8x8xf32>
    %90 = arith.mulf %85, %89 : vector<8x8xf32>
    %91 = arith.truncf %90 : vector<8x8xf32> to vector<8x8xbf16>
    %cst_29 = arith.constant dense<0.000000e+00> : vector<8x4xf32>
    %92 = tpu.matmul %91, %79, %cst_29 {dimension_numbers = #tpu.dot_dimension_numbers<[1], [0], [0], [1], [0, 0, 1, 1], [], []>} : vector<8x8xbf16>, vector<8x4xbf16>, vector<8x4xf32> -> vector<8x4xf32>
    %93 = vector.extract_strided_slice %6 {offsets = [0, 20], sizes = [8, 4], strides = [1, 1]} : vector<8x32xbf16> to vector<8x4xbf16>
    %94 = vector.extract_strided_slice %9 {offsets = [0, 20], sizes = [8, 4], strides = [1, 1]} : vector<8x32xbf16> to vector<8x4xbf16>
    %95 = vector.extract_strided_slice %12 {offsets = [0, 20], sizes = [8, 4], strides = [1, 1]} : vector<8x32xbf16> to vector<8x4xbf16>
    %cst_30 = arith.constant dense<0.000000e+00> : vector<8x8xf32>
    %96 = tpu.matmul %93, %94, %cst_30 {dimension_numbers = #tpu.dot_dimension_numbers<[1], [1], [0], [0], [0, 0, 1, 0], [], []>} : vector<8x4xbf16>, vector<8x4xbf16>, vector<8x8xf32> -> vector<8x8xf32>
    %cst_31 = arith.constant dense<0xFF800000> : vector<8xf32>
    %97 = vector.multi_reduction <maximumf>, %96, %cst_31 [1] : vector<8x8xf32> to vector<8xf32>
    %98 = vector.shape_cast %97 : vector<8xf32> to vector<8x1xf32>
    %99 = vector.broadcast %98 : vector<8x1xf32> to vector<8x8xf32>
    %100 = arith.subf %96, %99 : vector<8x8xf32>
    %101 = math.exp %100 : vector<8x8xf32>
    %cst_32 = arith.constant dense<0.000000e+00> : vector<8xf32>
    %102 = vector.multi_reduction <add>, %101, %cst_32 [1] : vector<8x8xf32> to vector<8xf32>
    %103 = vector.shape_cast %102 : vector<8xf32> to vector<8x1xf32>
    %104 = tpu.reciprocal %103 {approx = true} : vector<8x1xf32> -> vector<8x1xf32>
    %105 = vector.broadcast %104 : vector<8x1xf32> to vector<8x8xf32>
    %106 = arith.mulf %101, %105 : vector<8x8xf32>
    %107 = arith.truncf %106 : vector<8x8xf32> to vector<8x8xbf16>
    %cst_33 = arith.constant dense<0.000000e+00> : vector<8x4xf32>
    %108 = tpu.matmul %107, %95, %cst_33 {dimension_numbers = #tpu.dot_dimension_numbers<[1], [0], [0], [1], [0, 0, 1, 1], [], []>} : vector<8x8xbf16>, vector<8x4xbf16>, vector<8x4xf32> -> vector<8x4xf32>
    %109 = vector.extract_strided_slice %6 {offsets = [0, 24], sizes = [8, 4], strides = [1, 1]} : vector<8x32xbf16> to vector<8x4xbf16>
    %110 = vector.extract_strided_slice %9 {offsets = [0, 24], sizes = [8, 4], strides = [1, 1]} : vector<8x32xbf16> to vector<8x4xbf16>
    %111 = vector.extract_strided_slice %12 {offsets = [0, 24], sizes = [8, 4], strides = [1, 1]} : vector<8x32xbf16> to vector<8x4xbf16>
    %cst_34 = arith.constant dense<0.000000e+00> : vector<8x8xf32>
    %112 = tpu.matmul %109, %110, %cst_34 {dimension_numbers = #tpu.dot_dimension_numbers<[1], [1], [0], [0], [0, 0, 1, 0], [], []>} : vector<8x4xbf16>, vector<8x4xbf16>, vector<8x8xf32> -> vector<8x8xf32>
    %cst_35 = arith.constant dense<0xFF800000> : vector<8xf32>
    %113 = vector.multi_reduction <maximumf>, %112, %cst_35 [1] : vector<8x8xf32> to vector<8xf32>
    %114 = vector.shape_cast %113 : vector<8xf32> to vector<8x1xf32>
    %115 = vector.broadcast %114 : vector<8x1xf32> to vector<8x8xf32>
    %116 = arith.subf %112, %115 : vector<8x8xf32>
    %117 = math.exp %116 : vector<8x8xf32>
    %cst_36 = arith.constant dense<0.000000e+00> : vector<8xf32>
    %118 = vector.multi_reduction <add>, %117, %cst_36 [1] : vector<8x8xf32> to vector<8xf32>
    %119 = vector.shape_cast %118 : vector<8xf32> to vector<8x1xf32>
    %120 = tpu.reciprocal %119 {approx = true} : vector<8x1xf32> -> vector<8x1xf32>
    %121 = vector.broadcast %120 : vector<8x1xf32> to vector<8x8xf32>
    %122 = arith.mulf %117, %121 : vector<8x8xf32>
    %123 = arith.truncf %122 : vector<8x8xf32> to vector<8x8xbf16>
    %cst_37 = arith.constant dense<0.000000e+00> : vector<8x4xf32>
    %124 = tpu.matmul %123, %111, %cst_37 {dimension_numbers = #tpu.dot_dimension_numbers<[1], [0], [0], [1], [0, 0, 1, 1], [], []>} : vector<8x8xbf16>, vector<8x4xbf16>, vector<8x4xf32> -> vector<8x4xf32>
    %125 = vector.extract_strided_slice %6 {offsets = [0, 28], sizes = [8, 4], strides = [1, 1]} : vector<8x32xbf16> to vector<8x4xbf16>
    %126 = vector.extract_strided_slice %9 {offsets = [0, 28], sizes = [8, 4], strides = [1, 1]} : vector<8x32xbf16> to vector<8x4xbf16>
    %127 = vector.extract_strided_slice %12 {offsets = [0, 28], sizes = [8, 4], strides = [1, 1]} : vector<8x32xbf16> to vector<8x4xbf16>
    %cst_38 = arith.constant dense<0.000000e+00> : vector<8x8xf32>
    %128 = tpu.matmul %125, %126, %cst_38 {dimension_numbers = #tpu.dot_dimension_numbers<[1], [1], [0], [0], [0, 0, 1, 0], [], []>} : vector<8x4xbf16>, vector<8x4xbf16>, vector<8x8xf32> -> vector<8x8xf32>
    %cst_39 = arith.constant dense<0xFF800000> : vector<8xf32>
    %129 = vector.multi_reduction <maximumf>, %128, %cst_39 [1] : vector<8x8xf32> to vector<8xf32>
    %130 = vector.shape_cast %129 : vector<8xf32> to vector<8x1xf32>
    %131 = vector.broadcast %130 : vector<8x1xf32> to vector<8x8xf32>
    %132 = arith.subf %128, %131 : vector<8x8xf32>
    %133 = math.exp %132 : vector<8x8xf32>
    %cst_40 = arith.constant dense<0.000000e+00> : vector<8xf32>
    %134 = vector.multi_reduction <add>, %133, %cst_40 [1] : vector<8x8xf32> to vector<8xf32>
    %135 = vector.shape_cast %134 : vector<8xf32> to vector<8x1xf32>
    %136 = tpu.reciprocal %135 {approx = true} : vector<8x1xf32> -> vector<8x1xf32>
    %137 = vector.broadcast %136 : vector<8x1xf32> to vector<8x8xf32>
    %138 = arith.mulf %133, %137 : vector<8x8xf32>
    %139 = arith.truncf %138 : vector<8x8xf32> to vector<8x8xbf16>
    %cst_41 = arith.constant dense<0.000000e+00> : vector<8x4xf32>
    %140 = tpu.matmul %139, %127, %cst_41 {dimension_numbers = #tpu.dot_dimension_numbers<[1], [0], [0], [1], [0, 0, 1, 1], [], []>} : vector<8x8xbf16>, vector<8x4xbf16>, vector<8x4xf32> -> vector<8x4xf32>
    %141 = tpu.concatenate %28, %44, %60, %76, %92, %108, %124, %140 in 1 : vector<8x4xf32>, vector<8x4xf32>, vector<8x4xf32>, vector<8x4xf32>, vector<8x4xf32>, vector<8x4xf32>, vector<8x4xf32>, vector<8x4xf32> -> vector<8x32xf32>
    %c0_42 = arith.constant 0 : index
    %c0_43 = arith.constant 0 : index
    %142 = vector.load %arg10[%c0_42, %c0_43] : memref<8x32xf32, #tpu.memory_space<vmem>>, vector<8x32xf32>
    %143 = arith.truncf %141 : vector<8x32xf32> to vector<8x32xbf16>
    %c0_44 = arith.constant 0 : index
    %c0_45 = arith.constant 0 : index
    %144 = vector.load %arg6[%c0_44, %c0_45] : memref<32x32xbf16, #tpu.memory_space<vmem>>, vector<32x32xbf16>
    %cst_46 = arith.constant dense<0.000000e+00> : vector<8x32xf32>
    %145 = tpu.matmul %143, %144, %cst_46 {dimension_numbers = #tpu.dot_dimension_numbers<[1], [0], [0], [1], [0, 0, 1, 1], [], []>} : vector<8x32xbf16>, vector<32x32xbf16>, vector<8x32xf32> -> vector<8x32xf32>
    %146 = arith.addf %142, %145 : vector<8x32xf32>
    %c0_47 = arith.constant 0 : index
    %c0_48 = arith.constant 0 : index
    %147 = vector.load %arg10[%c0_47, %c0_48] : memref<8x32xf32, #tpu.memory_space<vmem>>, vector<8x32xf32>
    tpu.vector_store %arg10[%c0_47, %c0_48], %146 {strides = array<i32>} : memref<8x32xf32, #tpu.memory_space<vmem>>, vector<8x32xf32>,
    %c0_i32_49 = arith.constant 0 : i32
    %148 = arith.cmpi eq, %arg1, %c0_i32_49 : i32
    %149 = arith.extui %148 : i1 to i32
    %c0_i32_50 = arith.constant 0 : i32
    %150 = arith.cmpi ne, %149, %c0_i32_50 : i32
    scf.if %150 {
      %c0_51 = arith.constant 0 : index
      %c0_52 = arith.constant 0 : index
      %151 = vector.load %arg10[%c0_51, %c0_52] : memref<8x32xf32, #tpu.memory_space<vmem>>, vector<8x32xf32>
      %c0_53 = arith.constant 0 : index
      %c0_54 = arith.constant 0 : index
      %152 = vector.load %arg7[%c0_53, %c0_54] : memref<1x32xf32, #tpu.memory_space<vmem>>, vector<1x32xf32>
      %153 = vector.broadcast %152 : vector<1x32xf32> to vector<8x32xf32>
      %154 = arith.addf %151, %153 : vector<8x32xf32>
      %c0_55 = arith.constant 0 : index
      %c0_56 = arith.constant 0 : index
      %c0_57 = arith.constant 0 : index
      %155 = vector.load %arg8[%c0_55, %c0_56, %c0_57] : memref<1x8x32xf32, #tpu.memory_space<vmem>>, vector<1x8x32xf32>
      %156 = vector.shape_cast %155 : vector<1x8x32xf32> to vector<8x32xf32>
      %157 = vector.shape_cast %154 : vector<8x32xf32> to vector<1x8x32xf32>
      tpu.vector_store %arg8[%c0_55, %c0_56, %c0_57], %157 {strides = array<i32>} : memref<1x8x32xf32, #tpu.memory_space<vmem>>, vector<1x8x32xf32>,
    } else {
    }
    return
  }
  func.func @transform_0(%arg0: i32, %arg1: i32) -> (i32, i32, i32) {
    %c0_i32 = arith.constant 0 : i32
    %c0_i32_0 = arith.constant 0 : i32
    %c0_i32_1 = arith.constant 0 : i32
    return %arg0, %c0_i32, %c0_i32_0 : i32, i32, i32
  }
  func.func @transform_1(%arg0: i32, %arg1: i32) -> (i32, i32) {
    %c0_i32 = arith.constant 0 : i32
    %c0_i32_0 = arith.constant 0 : i32
    return %c0_i32, %arg1 : i32, i32
  }
  func.func @transform_2(%arg0: i32, %arg1: i32) -> (i32, i32) {
    %c0_i32 = arith.constant 0 : i32
    %c0_i32_0 = arith.constant 0 : i32
    return %c0_i32, %arg1 : i32, i32
  }
  func.func @transform_3(%arg0: i32, %arg1: i32) -> (i32, i32) {
    %c0_i32 = arith.constant 0 : i32
    %c0_i32_0 = arith.constant 0 : i32
    return %c0_i32, %arg1 : i32, i32
  }
  func.func @transform_4(%arg0: i32, %arg1: i32) -> (i32, i32) {
    %c0_i32 = arith.constant 0 : i32
    %c0_i32_0 = arith.constant 0 : i32
    return %arg1, %c0_i32 : i32, i32
  }
  func.func @transform_5(%arg0: i32, %arg1: i32) -> (i32, i32) {
    %c0_i32 = arith.constant 0 : i32
    %c0_i32_0 = arith.constant 0 : i32
    %c0_i32_1 = arith.constant 0 : i32
    return %c0_i32, %c0_i32_0 : i32, i32
  }
  func.func @transform_6(%arg0: i32, %arg1: i32) -> (i32, i32, i32) {
    %c0_i32 = arith.constant 0 : i32
    %c0_i32_0 = arith.constant 0 : i32
    %c0_i32_1 = arith.constant 0 : i32
    return %arg0, %c0_i32, %c0_i32_0 : i32, i32, i32
  }
}

</mosaic_0001>

<bundles_post_ra>
// kernel: tpu_custom_call.1
= control target key start
LH: loop header
LB: loop body
LE: loop exit
PB: predicated region body
PF: predicated region fallthrough
CT: control target
= control target key end

     0   :  { %s2859_s0 = inlined_call_operand.hbm [shape: f32[2,8,32], index: 0, kind: input, shape index: {}]   ;;  %s2860_s1 = inlined_call_operand.hbm [shape: bf16[32,32], index: 1, kind: input, shape index: {}]   ;;  %s2861_s2 = inlined_call_operand.hbm [shape: bf16[32,32], index: 2, kind: input, shape index: {}]   ;;  %s2862_s3 = inlined_call_operand.hbm [shape: bf16[32,32], index: 3, kind: input, shape index: {}]   ;;  %s2863_s4 = inlined_call_operand.hbm [shape: bf16[32,32], index: 4, kind: input, shape index: {}]   ;;  %s2864_s5 = inlined_call_operand.vmem [shape: f32[1,32], index: 5, kind: input, shape index: {}]   ;;  %s2865_s6 = inlined_call_operand.hbm [shape: f32[2,8,32], index: 6, kind: output, shape index: {}]  }
   0x1   :  { %2871 = sst [smem:[#allocation18_spill]] %s2860_s1 }
   0x2   :  { %11 = vsyncpa [#allocation5], 0 }
   0x3   :  { %13 = vsyncpa [#allocation5 + $0x1], 0 }
   0x4   :  { %14 = vsyncpa [#allocation8], 0 }
   0x5   :  { %15 = vsyncpa [#allocation11], 0 }
   0x6   :  { %16 = vsyncpa [#allocation6], 0 }
   0x7   :  { %18 = vsyncpa [#allocation6 + $0x1], 0  ;;  %s2364_s21 = smov 0   ;;  %s2366_s22 = smov 0  }
   0x8   :  { %s2368_s23 = smov 0   ;;  %s2370_s24 = smov 0  }
   0x9   :  { %s2372_s25 = smov 0   ;;  %s2374_s26 = smov 0  }
   0xa LB: > { %s2866_s27 = sadd.s32 4294967295, %s2303_s26   ;;  %p1690_p0 = scmp.ge.s32.totalorder %s2303_s26, 1  ;;  %s2303_s26 = sphi %s2374_s26, %s24_s26   ;;  %s2299_s25 = sphi %s2372_s25, %s2893_s25   ;;  %s2295_s24 = sphi %s2370_s24, %s2892_s24   ;;  %s2291_s23 = sphi %s2368_s23, %s2891_s23   ;;  %s2287_s22 = sphi %s2366_s22, %s2890_s22   ;;  %s2283_s21 = sphi %s2364_s21, %s2889_s21  }
   0xb   : > { %p2398_p1 = scmp.eq.s32.totalorder %s2866_s27, 0  ;;  %p218_p2 = scmp.lt.s32.totalorder %s2303_s26, 3 }
   0xc   : > { %s2305_s30 = smov [#allocation7]   ;;  %s2306_s9 = smov [#allocation10]  }
   0xd   : > { %s2872_s28 = scalar_select %p2398_p1, 1, 0 }
   0xe   : > { %p2403_p3 = pnand %p1690_p0, %p218_p2  ;;  %s232_s7 = sshll.u32 %s2305_s30, 4  ;;  %s2407_s7 = int_to_ptr.vmem [resolvable:$true] %s232_s7 }
   0xf   : > { %s262_s10 = sshll.u32 %s2306_s9, 4  ;;  %s2307_s11 = smov [#allocation9]   ;;  %s2418_s10 = int_to_ptr.vmem [resolvable:$true] %s262_s10 }
  0x10   : > { %s2873_s29 = scalar_select %p2403_p3, 1, 0 }
  0x11   : > { %p1930_p4 = pneg %p2403_p3  ;;  %s2420_s12 = sshll.u32 %s2307_s11, 4  ;;  %s248_s12 = int_to_ptr.vmem [resolvable:$true] %s2420_s12 }
  0x12   : > { %s2875_s1 = sld [smem:[#allocation18_spill]] }
  0x13   : > { %p2414_p6 = pnand %p1930_p4, %p2398_p1 }
  0x15   : > { %p2430_p8 = pneg %p2414_p6 }
  0x18   : > { %s2071_s15 = scalar_lea.hbm %s2875_s1, 256 }
  0x19   : > { %p2072_p7 = scmp.ne.s32.totalorder %s2875_s1, %s2071_s15  ;;  %p2078_p11 = scmp.lt.u32.totalorder %s2071_s15, %s2875_s1 }
  0x1b   : > { %p2074_p9 = pnand %p2430_p8, %p2072_p7 }
  0x1d   : > { %p2075_p10 = pneg %p2074_p9 }
  0x1f   : > { %p2080_p12 = pnand %p2078_p11, %p2075_p10 }
  0x21   : > { %2083 = shalt.err (!%p2080_p12)
}
  0x22   : > { %s2084_s30 = scalar_lea.vmem %s2407_s7, 256  ;;  %p2092_p4 = scmp.lt.s32.totalorder %s2407_s7, %s2407_s7 }
  0x23   : > { %p2085_p13 = scmp.ne.s32.totalorder %s2407_s7, %s2084_s30  ;;  %p2093_p5 = scmp.lt.s32.totalorder %s2084_s30, %s2084_s30 }
  0x25   : > { %p2087_p0 = pnand %p2085_p13, %p2430_p8  ;;  %p2094_p7 = por %p2093_p5, %p2092_p4 }
  0x27   : > { %p2088_p2 = pneg %p2087_p0 }
  0x29   : > { %p2095_p9 = pnand %p2094_p7, %p2088_p2 }
  0x2b   : > { %2098 = shalt.err (!%p2095_p9)
}
  0x2c   : > { %s2308_s9 = smov 64   ;;  %s2309_s11 = smov 4  }
  0x2d   : > { %1933 = dma.hbm_to_vmem [thread:$0]  (!%p2414_p6), %s2875_s1, 256, %s2407_s7, [#allocation8], %s2308_s9, %s2308_s9, %s2309_s11  }
  0x2e   : > { %s2099_s17 = scalar_lea.hbm %s2862_s3, 256 }
  0x2f   : > { %p2100_p5 = scmp.ne.s32.totalorder %s2862_s3, %s2099_s17  ;;  %p2106_p12 = scmp.lt.u32.totalorder %s2099_s17, %s2862_s3 }
  0x31   : > { %p2102_p10 = pnand %p2100_p5, %p2430_p8 }
  0x33   : > { %p2103_p11 = pneg %p2102_p10 }
  0x35   : > { %p2108_p13 = pnand %p2106_p12, %p2103_p11 }
  0x37   : > { %2111 = shalt.err (!%p2108_p13)
}
  0x38   : > { %s2112_s7 = scalar_lea.vmem %s2418_s10, 256  ;;  %p2120_p7 = scmp.lt.s32.totalorder %s2418_s10, %s2418_s10 }
  0x39   : > { %p2113_p0 = scmp.ne.s32.totalorder %s2418_s10, %s2112_s7  ;;  %p2121_p9 = scmp.lt.s32.totalorder %s2112_s7, %s2112_s7 }
  0x3b   : > { %p2115_p2 = pnand %p2113_p0, %p2430_p8  ;;  %p2122_p5 = por %p2121_p9, %p2120_p7 }
  0x3d   : > { %p2116_p4 = pneg %p2115_p2 }
  0x3f   : > { %p2123_p10 = pnand %p2122_p5, %p2116_p4 }
  0x41   : > { %2126 = shalt.err (!%p2123_p10)
}
  0x42   : > { %1939 = dma.hbm_to_vmem [thread:$0]  (!%p2414_p6), %s2862_s3, 256, %s2418_s10, [#allocation11], %s2308_s9, %s2308_s9, %s2309_s11  }
  0x43   : > { %s2127_s16 = scalar_lea.hbm %s2861_s2, 256 }
  0x44   : > { %p2128_p11 = scmp.ne.s32.totalorder %s2861_s2, %s2127_s16  ;;  %p2134_p0 = scmp.lt.u32.totalorder %s2127_s16, %s2861_s2 }
  0x46   : > { %p2130_p12 = pnand %p2128_p11, %p2430_p8 }
  0x48   : > { %p2131_p13 = pneg %p2130_p12 }
  0x4a   : > { %p2136_p2 = pnand %p2134_p0, %p2131_p13 }
  0x4c   : > { %2139 = shalt.err (!%p2136_p2)
}
  0x4d   : > { %s2140_s7 = scalar_lea.vmem %s248_s12, 256  ;;  %p2148_p5 = scmp.lt.s32.totalorder %s248_s12, %s248_s12 }
  0x4e   : > { %p2141_p4 = scmp.ne.s32.totalorder %s248_s12, %s2140_s7  ;;  %p2149_p10 = scmp.lt.s32.totalorder %s2140_s7, %s2140_s7 }
  0x50   : > { %p2143_p7 = pnand %p2141_p4, %p2430_p8  ;;  %p2150_p3 = por %p2149_p10, %p2148_p5 }
  0x52   : > { %p2144_p9 = pneg %p2143_p7 }
  0x54   : > { %p2151_p1 = pnand %p2150_p3, %p2144_p9 }
  0x56   : > { %2154 = shalt.err (!%p2151_p1)
}
  0x57   : > { %1936 = dma.hbm_to_vmem [thread:$0]  (!%p2414_p6), %s2861_s2, 256, %s248_s12, [#allocation8], %s2308_s9, %s2308_s9, %s2309_s11  }
  0x58   : > { %s2310_s13 = smov [#allocation12]   ;;  %s2155_s17 = scalar_lea.hbm %s2863_s4, 256 }
  0x59   : > { %s278_s14 = sshll.u32 %s2310_s13, 4  ;;  %p2156_p1 = scmp.ne.s32.totalorder %s2863_s4, %s2155_s17  ;;  %s279_s14 = int_to_ptr.vmem [resolvable:$true] %s278_s14 }
  0x5a   : > { %p2162_p12 = scmp.lt.u32.totalorder %s2155_s17, %s2863_s4 }
  0x5b   : > { %p2158_p3 = pnand %p2156_p1, %p2430_p8 }
  0x5d   : > { %p2159_p11 = pneg %p2158_p3 }
  0x5f   : > { %p2164_p13 = pnand %p2162_p12, %p2159_p11 }
  0x61   : > { %2167 = shalt.err (!%p2164_p13)
}
  0x62   : > { %s2168_s12 = scalar_lea.vmem %s279_s14, 256  ;;  %p2176_p7 = scmp.lt.s32.totalorder %s279_s14, %s279_s14 }
  0x63   : > { %p2169_p0 = scmp.ne.s32.totalorder %s279_s14, %s2168_s12  ;;  %p2177_p9 = scmp.lt.s32.totalorder %s2168_s12, %s2168_s12 }
  0x65   : > { %p2171_p2 = pnand %p2169_p0, %p2430_p8  ;;  %p2178_p5 = por %p2177_p9, %p2176_p7 }
  0x67   : > { %p2172_p4 = pneg %p2171_p2 }
  0x69   : > { %p2179_p10 = pnand %p2178_p5, %p2172_p4 }
  0x6b   : > { %2182 = shalt.err (!%p2179_p10)
}
  0x6c   : > { %1942 = dma.hbm_to_vmem [thread:$0]  (!%p2414_p6), %s2863_s4, 256, %s279_s14, [#allocation11], %s2308_s9, %s2308_s9, %s2309_s11  }
  0x6d   : > { %s1689_s8 = sadd.s32 4294967294, %s2303_s26   ;;  %s36_s18 = sadd.s32 1, %s2299_s25 }
  0x6e   : > { %p38_p8 = scmp.ge.s32.totalorder %s36_s18, 2  ;;  %s43_s13 = sadd.s32 1, %s2291_s23 }
  0x6f   : > { %p50_p1 = scmp.ne.s32.totalorder %s2291_s23, %s2287_s22  ;;  %p51_p3 = scmp.eq.s32.totalorder %s2303_s26, 0 }
  0x70   : > { %s2895_s18 = smov (%p38_p8, %s36_s18), 0  ;;  %p56_p12 = scmp.ne.s32.totalorder %s2287_s22, %s2283_s21 }
  0x71   : > { %p2531_p11 = por %p51_p3, %p50_p1  ;;  %s40_s9 = ssub.s32 %s2299_s25, %s2895_s18 }
  0x72   : > { %s2878_s11 = sadd.s32 4294967295, %s2303_s26   ;;  %p41_p13 = scmp.eq.s32.totalorder %s40_s9, 0 }
  0x73   : > { %p205_p6 = scmp.eq.s32.totalorder %s2878_s11, 1  ;;  %p2879_p0 = scmp.ne.s32.totalorder %s2872_s28, 0 }
  0x74   : > { %p211_p7 = scmp.eq.s32.totalorder %s1689_s8, 1  ;;  %p1955_p5 = scmp.lt.s32.totalorder %s2303_s26, 2 }
  0x75   : > { %p2543_p2 = por %p2879_p0, %p56_p12  ;;  %p2547_p4 = por %p205_p6, %p50_p1 }
  0x76   : > { %s2552_s17 = scalar_select %p41_p13, %s2291_s23, %s43_s13  }
  0x77   : > { %s2881_s16 = scalar_select %p2547_p4, 1, 0 }
  0x78   : > { %p2554_p9 = por %p211_p7, %p56_p12  ;;  %s295_s20 = sand.u32 1, %s2291_s23  }
  0x79   : > { %s1697_s30 = sshll.u32 %s2299_s25, 7  ;;  %s1696_s7 = sshll.u32 %s295_s20, 3 }
  0x7a   : > { %s2882_s19 = scalar_select %p2554_p9, 1, 0 }
  0x7b   : > { %s2564_s27 = scalar_lea.hbm %s2859_s0, %s1697_s30  ;;  %s299_s8 = scalar_lea.vmem [#allocation4], %s1696_s7 }
  0x7c   : > { %s306_s13 = sshll.u32 %s299_s8, 4  ;;  %p2568_p10 = pnand %p1955_p5, %p2531_p11  ;;  %s2572_s13 = int_to_ptr.vmem [resolvable:$true] %s306_s13 }
  0x7d   : > { %s296_s11 = scalar_lea.sflag [#allocation5], %s295_s20  ;;  %s2183_s1 = scalar_lea.hbm %s2564_s27, 128 }
  0x7e   : > { %p2184_p8 = scmp.ne.s32.totalorder %s2564_s27, %s2183_s1  ;;  %p2185_p1 = pneg %p2568_p10 }
  0x7f   : > { %s2188_s15 = scalar_lea.hbm %s2859_s0, 256  ;;  %p2189_p11 = scmp.lt.u32.totalorder %s2564_s27, %s2859_s0 }
  0x80   : > { %p2186_p3 = pnand %p2185_p1, %p2184_p8  ;;  %p2190_p6 = scmp.lt.u32.totalorder %s2188_s15, %s2183_s1 }
  0x81   : > { %p2192_p0 = scmp.lt.u32.totalorder %s2183_s1, %s2564_s27 }
  0x82   : > { %p2187_p12 = pneg %p2186_p3  ;;  %p2191_p13 = por %p2190_p6, %p2189_p11 }
  0x84   : > { %p2193_p7 = por %p2192_p0, %p2191_p13 }
  0x86   : > { %p2194_p5 = pnand %p2193_p7, %p2187_p12 }
  0x88   : > { %2197 = shalt.err (!%p2194_p5)
}
  0x89   : > { %s2198_s20 = scalar_lea.vmem %s2572_s13, 128  ;;  %s2311_s8 = smov [#allocation4]  }
  0x8a   : > { %p2199_p8 = scmp.ne.s32.totalorder %s2572_s13, %s2198_s20  ;;  %s2203_s30 = sshll.u32 %s2311_s8, 4  ;;  %s2204_s30 = int_to_ptr.vmem [resolvable:$false] %s2203_s30 }
  0x8b   : > { %s2205_s7 = scalar_lea.vmem %s2204_s30, 256  ;;  %p2206_p4 = scmp.lt.s32.totalorder %s2572_s13, %s2204_s30 }
  0x8c   : > { %p2201_p3 = pnand %p2199_p8, %p2185_p1  ;;  %p2207_p11 = scmp.lt.s32.totalorder %s2205_s7, %s2198_s20 }
  0x8e   : > { %p2202_p9 = pneg %p2201_p3  ;;  %p2208_p6 = por %p2207_p11, %p2206_p4 }
  0x90   : > { %p2209_p13 = pnand %p2208_p6, %p2202_p9 }
  0x92   : > { %2212 = shalt.err (!%p2209_p13)
}
  0x93   : > { %1946 = dma.hbm_to_vmem [thread:$0]  (!%p2568_p10), %s2564_s27, 128, %s2572_s13, %s296_s11  }
  0x94   : > { %p2884_p12 = scmp.ne.s32.totalorder %s2873_s29, 0 }
  0x95   : > { %s2602_s1 = sand.u32 (!%p2884_p12), 1, %s2287_s22  }
  0x96   : > { %315 = sbr.rel (%p2884_p12) target bundleno = 1694 (0x69e), region = 44  ;;  %s1699_s15 = sshll.u32 (!%p2884_p12), %s2602_s1, 3 }
  0x97   : > { %s318_s12 = scalar_lea.sflag (!%p2884_p12), [#allocation5], %s2602_s1  ;;  %s321_s10 = scalar_lea.vmem (!%p2884_p12), [#allocation4], %s1699_s15 }
  0x9d   : > { %2266 = dma.done.wait (%p2543_p2), %s318_s12, 128  }
  0x9e   : > { %2268 = vsyncadd (%p2543_p2), %s318_s12, 4294967168  ;;  %p2885_p4 = scmp.ne.s32.totalorder %s2872_s28, 0 }
  0xa0   : > { %2270 = dma.done.wait (%p2885_p4), [#allocation8], 512  }
  0xa1   : > { %2272 = vsyncadd (%p2885_p4), [#allocation8], 4294966784 }
  0xa2   : > { %2274 = dma.done.wait (%p2885_p4), [#allocation11], 512  }
  0xa3   : > { %2276 = vsyncadd (%p2885_p4), [#allocation11], 4294966784  ;;  %vm376_vm0 = vcmask 261120   ;;  %v2312_v0 = vmov 0.0   ;;  %vm2313_vm1 = vmmov 0   ;;  %v2031_v1 = vld [vmem:[#allocation9] sm:$0xff]  }
  0xa4   : > { %1790 = vmatprep.subr.bf16.mxu1 %v2312_v0  ;;  %1782 = vmatprep.subr.bf16.mxu0 %v2312_v0  ;;  %377 = vst.msk [vmem:[#allocation3] sm:$0xff] %vm376_vm0, %v2312_v0  ;;  %v2032_v2 = vld [vmem:[#allocation7] sm:$0xff]   ;;  %v2033_v3 = vld [vmem:[#allocation9 + $0x8] sm:$0xff]   ;;  %vm374_vm2 = vcmask 257024   ;;  %v2034_v6 = vld [vmem:[#allocation7 + $0x8] sm:$0xff]   ;;  %vm554_vm3 = vcmask 31744  }
  0xa5   : > { %1794 = vmatprep.mubr.msk.bf16.mxu1 %vm2313_vm1, %v2312_v0  ;;  %1786 = vmatprep.mubr.msk.bf16.mxu0 %vm2313_vm1, %v2312_v0  ;;  %v372_v4 = vld [vmem:[%s321_s10] sm:$0xff]  ;;  %s2314_s28 = smov 120   ;;  %s2315_s29 = smov 124   ;;  %v2035_v19 = vld [vmem:[#allocation10] sm:$0xff]   ;;  %v2036_v20 = vld [vmem:[#allocation10 + $0x8] sm:$0xff]   ;;  %vm601_vm4 = vcmask 64512  }
  0xa6   : > { %1791 = vmatpush3.bf16.msra.mxu1 %v2031_v1  ;;  %1783 = vmatpush3.bf16.msra.mxu0 %v2032_v2  ;;  %v373_v5 = vpack.c.bf16 %v372_v4, %v372_v4  ;;  %s2316_s14 = smov 116   ;;  %s2317_s27 = smov 112   ;;  %vm617_vm5 = vcmask 1043456   ;;  %vm1464_vm6 = vcmask 97280   ;;  %vm1466_vm7 = vcmask 130048  }
  0xa7   : > { %1792 = vmatprep.subr.bf16.mxu1 %v2312_v0  ;;  %1784 = vmatprep.subr.bf16.mxu0 %v2312_v0  ;;  %s2318_s13 = smov 108   ;;  %s2319_s9 = smov 104   ;;  %vm1468_vm8 = vcmask 162816   ;;  %vm1470_vm9 = vcmask 195584   ;;  %vm1472_vm10 = vcmask 228352  }
  0xa8   : > { %375 = vst.msk [vmem:[#allocation2] sm:$0xf] %vm374_vm2, %v373_v5  ;;  %s2320_s11 = smov 100   ;;  %s2321_s20 = smov 4  }
  0xa9   : > { %s2322_s8 = smov 8   ;;  %s2323_s30 = smov 12  }
  0xaa   : > { %1793 = vmatpush3.bf16.msra.mxu1 %v2033_v3  ;;  %1785 = vmatpush3.bf16.msra.mxu0 %v2034_v6  ;;  %s2324_s7 = smov 16   ;;  %s2325_s12 = smov 20  }
  0xab   : > { %1806 = vmatprep.subr.bf16.mxu1 %v2312_v0  ;;  %1798 = vmatprep.subr.bf16.mxu0 %v2312_v0  ;;  %s2326_s10 = smov 24   ;;  %p2886_p9 = scmp.ne.s32.totalorder %s2881_s16, 0 }
  0xaf   : > { %v378_v7 = vld [vmem:[#allocation2] sm:$0xf] }
  0xb0   : > { %1795 = vmatmul.mubr.msk.bf16.vlgmr.msra.gmra.mrb[0].mxu1 %vm376_vm0, %v378_v7  ;;  %1787 = vmatmul.mubr.msk.bf16.vlgmr.msra.gmra.mrb[0].mxu0 %vm376_vm0, %v378_v7 }
  0xb1   : > { %1808 = vmatprep.mubr.msk.bf16.mxu1 %vm2313_vm1, %v2312_v0  ;;  %1802 = vmatprep.mubr.msk.bf16.mxu0 %vm2313_vm1, %v2312_v0 }
  0xb2   : > { %1799 = vmatpush3.bf16.msra.mxu0 %v2035_v19 }
  0xb3   : > { %1800 = vmatprep.subr.bf16.mxu0 %v2312_v0 }
  0xb6   : > { %1801 = vmatpush3.bf16.msra.mxu0 %v2036_v20 }
  0xb7   : > { %1812 = vmatprep.subr.bf16.mxu0 %v2312_v0 }
  0xb9   : > { %1803 = vmatmul.mubr.msk.bf16.vlgmr.msra.gmra.mrb[4].mxu0 %vm376_vm0, %v378_v7 }
  0xba   : > { %1814 = vmatprep.mubr.msk.bf16.mxu0 %vm2313_vm1, %v2312_v0 }
 0x183   : > { %v490_v8 = vpop.f32.mrb[0].mxu1  ;;  %v433_v9 = vpop.f32.mrb[0].mxu0 }
 0x184   : > { %v496_v10 = vpack.c.bf16 %v490_v8, %v490_v8  ;;  %v1796_v11 = vpop.f32.mrb[1].mxu1  ;;  %v1788_v12 = vpop.f32.mrb[1].mxu0  ;;  %v439_v16 = vpack.c.bf16 %v433_v9, %v433_v9 }
 0x185   : > { %v493_v13 = vpop.f32.mrb[2].mxu1  ;;  %v436_v14 = vpop.f32.mrb[2].mxu0 }
 0x186   : > { %776 = vrot.lane.b32.xlu1 %v496_v10, %s2314_s28  ;;  %665 = vrot.lane.b32.xlu0 %v496_v10, %s2315_s29  ;;  %v1797_v15 = vpop.f32.mrb[3].mxu1  ;;  %v559_v17 = vsel %vm554_vm3, %v496_v10, 0  ;;  %v1789_v18 = vpop.f32.mrb[3].mxu0 }
 0x187   : > { %1807 = vmatpush3.bf16.xpose.msra.mxu1 %v559_v17 }
 0x188   : > { %1818 = vmatprep.subr.bf16.mxu1 %v2312_v0 }
 0x18a   : > { %774 = vrot.lane.b32.xlu1 %v439_v16, %s2314_s28  ;;  %662 = vrot.lane.b32.xlu0 %v439_v16, %s2315_s29 }
 0x18c   : > { %v547_v47 = vpop.f32.mrb[4].mxu0 }
 0x18d   : > { %v2698_v48 = vpack.c.bf16 %v547_v47, %v547_v47  ;;  %v1804_v49 = vpop.f32.mrb[5].mxu0 }
 0x18e   : > { %884 = vrot.lane.b32.xlu1 %v439_v16, %s2316_s14  ;;  %886 = vrot.lane.b32.xlu0 %v496_v10, %s2316_s14  ;;  %v550_v50 = vpop.f32.mrb[6].mxu0 }
 0x18f   : > { %1809 = vmatmul.mubr.msk.bf16.vlgmr.msra.gmra.mrb[4].mxu1 %vm554_vm3, %v439_v16  ;;  %v1805_v51 = vpop.f32.mrb[7].mxu0  ;;  %v619_v52 = vsel %vm617_vm5, %v2698_v48, 0 }
 0x190   : > { %1820 = vmatprep.mubr.msk.bf16.mxu1 %vm2313_vm1, %v2312_v0  ;;  %1813 = vmatpush3.bf16.msra.mxu0 %v619_v52 }
 0x191   : > { %1824 = vmatprep.subr.bf16.mxu0 %v2312_v0 }
 0x192   : > { %994 = vrot.lane.b32.xlu1 %v439_v16, %s2317_s27  ;;  %996 = vrot.lane.b32.xlu0 %v496_v10, %s2317_s27 }
 0x196   : > { %1104 = vrot.lane.b32.xlu1 %v439_v16, %s2318_s13  ;;  %1106 = vrot.lane.b32.xlu0 %v496_v10, %s2318_s13 }
 0x19a   : > { %1214 = vrot.lane.b32.xlu1 %v439_v16, %s2319_s9  ;;  %1216 = vrot.lane.b32.xlu0 %v496_v10, %s2319_s9 }
 0x19e   : > { %1324 = vrot.lane.b32.xlu1 %v439_v16, %s2320_s11  ;;  %1326 = vrot.lane.b32.xlu0 %v496_v10, %s2320_s11 }
 0x1f8   : > { %v666_v21 = vpop.permute.xlu0 %665  ;;  %v777_v23 = vpop.permute.xlu1 %776 }
 0x1f9   : > { %v671_v22 = vsel %vm554_vm3, %v666_v21, 0  ;;  %v782_v25 = vsel %vm554_vm3, %v777_v23, 0 }
 0x1fa   : > { %1819 = vmatpush3.bf16.xpose.msra.mxu1 %v671_v22 }
 0x1fb   : > { %1830 = vmatprep.subr.bf16.mxu1 %v2312_v0 }
 0x1fc   : > { %v663_v24 = vpop.permute.xlu0 %662  ;;  %v775_v27 = vpop.permute.xlu1 %774 }
 0x200   : > { %v887_v26 = vpop.permute.xlu0 %886  ;;  %v885_v30 = vpop.permute.xlu1 %884 }
 0x201   : > { %1821 = vmatmul.mubr.msk.bf16.vlgmr.msra.gmra.mrb[8].mxu1 %vm554_vm3, %v663_v24  ;;  %v892_v28 = vsel %vm554_vm3, %v887_v26, 0 }
 0x202   : > { %1831 = vmatpush3.bf16.xpose.msra.mxu1 %v782_v25  ;;  %1832 = vmatprep.mubr.msk.bf16.mxu1 %vm2313_vm1, %v2312_v0 }
 0x203   : > { %1842 = vmatprep.subr.bf16.mxu1 %v2312_v0 }
 0x204   : > { %v997_v29 = vpop.permute.xlu0 %996  ;;  %v995_v33 = vpop.permute.xlu1 %994 }
 0x205   : > { %v1002_v31 = vsel %vm554_vm3, %v997_v29, 0 }
 0x208   : > { %v1107_v32 = vpop.permute.xlu0 %1106  ;;  %v1105_v36 = vpop.permute.xlu1 %1104 }
 0x209   : > { %1833 = vmatmul.mubr.msk.bf16.vlgmr.msra.gmra.mrb[12].mxu1 %vm554_vm3, %v775_v27  ;;  %v1112_v34 = vsel %vm554_vm3, %v1107_v32, 0 }
 0x20a   : > { %1843 = vmatpush3.bf16.xpose.msra.mxu1 %v892_v28  ;;  %1844 = vmatprep.mubr.msk.bf16.mxu1 %vm2313_vm1, %v2312_v0 }
 0x20b   : > { %1854 = vmatprep.subr.bf16.mxu1 %v2312_v0 }
 0x20c   : > { %v1217_v35 = vpop.permute.xlu0 %1216  ;;  %v1215_v39 = vpop.permute.xlu1 %1214 }
 0x20d   : > { %v1222_v37 = vsel %vm554_vm3, %v1217_v35, 0 }
 0x210   : > { %v1327_v38 = vpop.permute.xlu0 %1326  ;;  %v1325_v41 = vpop.permute.xlu1 %1324 }
 0x211   : > { %1845 = vmatmul.mubr.msk.bf16.vlgmr.msra.gmra.mrb[16].mxu1 %vm554_vm3, %v885_v30  ;;  %v1332_v40 = vsel %vm554_vm3, %v1327_v38, 0 }
 0x212   : > { %1855 = vmatpush3.bf16.xpose.msra.mxu1 %v1002_v31  ;;  %1856 = vmatprep.mubr.msk.bf16.mxu1 %vm2313_vm1, %v2312_v0 }
 0x213   : > { %1866 = vmatprep.subr.bf16.mxu1 %v2312_v0 }
 0x219   : > { %1857 = vmatmul.mubr.msk.bf16.vlgmr.msra.gmra.mrb[20].mxu1 %vm554_vm3, %v995_v33 }
 0x21a   : > { %1867 = vmatpush3.bf16.xpose.msra.mxu1 %v1112_v34  ;;  %1868 = vmatprep.mubr.msk.bf16.mxu1 %vm2313_vm1, %v2312_v0 }
 0x21b   : > { %1878 = vmatprep.subr.bf16.mxu1 %v2312_v0 }
 0x221   : > { %1869 = vmatmul.mubr.msk.bf16.vlgmr.msra.gmra.mrb[24].mxu1 %vm554_vm3, %v1105_v36 }
 0x222   : > { %1879 = vmatpush3.bf16.xpose.msra.mxu1 %v1222_v37  ;;  %1880 = vmatprep.mubr.msk.bf16.mxu1 %vm2313_vm1, %v2312_v0 }
 0x223   : > { %1890 = vmatprep.subr.bf16.mxu1 %v2312_v0 }
 0x229   : > { %1881 = vmatmul.mubr.msk.bf16.vlgmr.msra.gmra.mrb[28].mxu1 %vm554_vm3, %v1215_v39 }
 0x22a   : > { %1891 = vmatpush3.bf16.xpose.msra.mxu1 %v1332_v40  ;;  %1892 = vmatprep.mubr.msk.bf16.mxu1 %vm2313_vm1, %v2312_v0 }
 0x22b   : > { %1902 = vmatprep.subr.bf16.mxu1 %v2312_v0 }
 0x231   : > { %1893 = vmatmul.mubr.msk.bf16.vlgmr.msra.gmra.mrb[32].mxu1 %vm554_vm3, %v1325_v41 }
 0x232   : > { %1906 = vmatprep.mubr.msk.bf16.mxu1 %vm2313_vm1, %v2312_v0 }
 0x262   : > { %v595_v42 = vpop.f32.mrb[4].mxu1 }
 0x263   : > { %v1810_v43 = vpop.f32.mrb[5].mxu1  ;;  %v602_v44 = vsel %vm601_vm4, %v595_v42, -inf }
 0x264   : > { %603 = vmax.xlane.f32.xlu0 %v602_v44  ;;  %v598_v45 = vpop.f32.mrb[6].mxu1 }
 0x265   : > { %v1811_v46 = vpop.f32.mrb[7].mxu1 }
 0x2d4   : > { %v707_v53 = vpop.f32.mrb[8].mxu1 }
 0x2d5   : > { %v1822_v54 = vpop.f32.mrb[9].mxu1  ;;  %v713_v55 = vsel %vm601_vm4, %v707_v53, -inf }
 0x2d6   : > { %714 = vmax.xlane.f32.xlu1 %v713_v55  ;;  %v710_v56 = vpop.f32.mrb[10].mxu1 }
 0x2d7   : > { %v1823_v57 = vpop.f32.mrb[11].mxu1 }
 0x2dc   : > { %v818_v58 = vpop.f32.mrb[12].mxu1 }
 0x2dd   : > { %v1834_v59 = vpop.f32.mrb[13].mxu1  ;;  %v824_v60 = vsel %vm601_vm4, %v818_v58, -inf }
 0x2de   : > { %825 = vmax.xlane.f32.xlu0 %v824_v60  ;;  %v821_v61 = vpop.f32.mrb[14].mxu1 }
 0x2df   : > { %v1835_v62 = vpop.f32.mrb[15].mxu1 }
 0x2e4   : > { %v928_v63 = vpop.f32.mrb[16].mxu1 }
 0x2e5   : > { %v1846_v1 = vpop.f32.mrb[17].mxu1  ;;  %v934_v2 = vsel %vm601_vm4, %v928_v63, -inf }
 0x2e6   : > { %935 = vmax.xlane.f32.xlu0 %v934_v2  ;;  %v931_v3 = vpop.f32.mrb[18].mxu1 }
 0x2e7   : > { %v1847_v4 = vpop.f32.mrb[19].mxu1 }
 0x2ec   : > { %v2706_v5 = vpop.f32.mrb[20].mxu1 }
 0x2ed   : > { %v1858_v6 = vpop.f32.mrb[21].mxu1  ;;  %v1044_v7 = vsel %vm601_vm4, %v2706_v5, -inf }
 0x2ee   : > { %1045 = vmax.xlane.f32.xlu1 %v1044_v7  ;;  %v1041_v8 = vpop.f32.mrb[22].mxu1 }
 0x2ef   : > { %v1859_v9 = vpop.f32.mrb[23].mxu1 }
 0x2f1   : > { %v604_v10 = vpop.xlane.xlu0 %603 }
 0x2f2   : > { %v605_v11 = vsub.f32 %v595_v42, %v604_v10 }
 0x2f4   : > { %v606_v12 = vmul.f32 1.442695, %v605_v11  ;;  %v2710_v13 = vpop.f32.mrb[24].mxu1 }
 0x2f5   : > { %v1870_v14 = vpop.f32.mrb[25].mxu1  ;;  %v1154_v15 = vsel %vm601_vm4, %v2710_v13, -inf }
 0x2f6   : > { %2039 = vpow2.f32 %v606_v12  ;;  %1155 = vmax.xlane.f32.xlu0 %v1154_v15  ;;  %v1151_v16 = vpop.f32.mrb[26].mxu1 }
 0x2f7   : > { %v1871_v17 = vpop.f32.mrb[27].mxu1 }
 0x2fc   : > { %v1258_v18 = vpop.f32.mrb[28].mxu1 }
 0x2fd   : > { %v1882_v19 = vpop.f32.mrb[29].mxu1  ;;  %v1264_v20 = vsel %vm601_vm4, %v1258_v18, -inf }
 0x2fe   : > { %1265 = vmax.xlane.f32.xlu1 %v1264_v20  ;;  %v1261_v21 = vpop.f32.mrb[30].mxu1 }
 0x2ff   : > { %v1883_v22 = vpop.f32.mrb[31].mxu1 }
 0x300   : > { %v2040_v23 = vpop.eup %2039 }
 0x301   : > { %v608_v24 = vsel %vm601_vm4, %v2040_v23, 0.0 }
 0x302   : > { %609 = vadd.xlane.f32.xlu1 %v608_v24 }
 0x304   : > { %v1368_v25 = vpop.f32.mrb[32].mxu1 }
 0x305   : > { %v1894_v26 = vpop.f32.mrb[33].mxu1  ;;  %v1374_v27 = vsel %vm601_vm4, %v1368_v25, -inf }
 0x306   : > { %1375 = vmax.xlane.f32.xlu0 %v1374_v27  ;;  %v1371_v28 = vpop.f32.mrb[34].mxu1 }
 0x307   : > { %v1895_v29 = vpop.f32.mrb[35].mxu1 }
 0x313   : > { %836 = vrot.lane.b32.xlu1 %v2698_v48, %s2314_s28  ;;  %s2327_s28 = smov 28  }
 0x31c   : > { %726 = vrot.lane.b32.xlu0 %v2698_v48, %s2315_s29 }
 0x363   : > { %v715_v30 = vpop.xlane.xlu1 %714 }
 0x364   : > { %v716_v31 = vsub.f32 %v707_v53, %v715_v30 }
 0x366   : > { %v717_v32 = vmul.f32 1.442695, %v716_v31 }
 0x368   : > { %2041 = vpow2.f32 %v717_v32 }
 0x36b   : > { %v826_v33 = vpop.xlane.xlu0 %825 }
 0x36c   : > { %v827_v34 = vsub.f32 %v818_v58, %v826_v33 }
 0x36e   : > { %v828_v35 = vmul.f32 1.442695, %v827_v34 }
 0x370   : > { %2043 = vpow2.f32 %v828_v35 }
 0x372   : > { %v2721_v36 = vpop.eup %2041 }
 0x373   : > { %v936_v37 = vpop.xlane.xlu0 %935  ;;  %v719_v38 = vsel %vm601_vm4, %v2721_v36, 0.0 }
 0x374   : > { %v937_v39 = vsub.f32 %v928_v63, %v936_v37  ;;  %720 = vadd.xlane.f32.xlu0 %v719_v38 }
 0x376   : > { %v938_v40 = vmul.f32 1.442695, %v937_v39 }
 0x378   : > { %2045 = vpow2.f32 %v938_v40 }
 0x37a   : > { %v2725_v41 = vpop.eup %2043 }
 0x37b   : > { %v830_v42 = vsel %vm601_vm4, %v2725_v41, 0.0  ;;  %v1046_v45 = vpop.xlane.xlu1 %1045 }
 0x37c   : > { %831 = vadd.xlane.f32.xlu1 %v830_v42  ;;  %v1047_v52 = vsub.f32 %v2706_v5, %v1046_v45 }
 0x37e   : > { %v1048_v57 = vmul.f32 1.442695, %v1047_v52 }
 0x382   : > { %v2729_v43 = vpop.eup %2045 }
 0x383   : > { %v940_v44 = vsel %vm601_vm4, %v2729_v43, 0.0  ;;  %v1156_v49 = vpop.xlane.xlu0 %1155 }
 0x384   : > { %941 = vadd.xlane.f32.xlu0 %v940_v44  ;;  %v1157_v58 = vsub.f32 %v2710_v13, %v1156_v49 }
 0x386   : > { %v1158_v60 = vmul.f32 1.442695, %v1157_v58 }
 0x38b   : > { %v1266_v46 = vpop.xlane.xlu1 %1265 }
 0x38c   : > { %v1267_v59 = vsub.f32 %v1258_v18, %v1266_v46 }
 0x38d   : > { %946 = vrot.lane.b32.xlu1 %v2698_v48, %s2316_s14 }
 0x38e   : > { %v1268_v62 = vmul.f32 1.442695, %v1267_v59 }
 0x38f   : > { %v610_v47 = vpop.xlane.xlu1 %609 }
 0x390   : > { %2047 = vrcp.f32 %v610_v47 }
 0x391   : > { %2049 = vpow2.f32 %v1048_v57 }
 0x392   : > { %2051 = vpow2.f32 %v1158_v60 }
 0x393   : > { %v1376_v50 = vpop.xlane.xlu0 %1375  ;;  %2053 = vpow2.f32 %v1268_v62  ;;  %v837_v10 = vpop.permute.xlu1 %836 }
 0x394   : > { %v1377_v61 = vsub.f32 %v1368_v25, %v1376_v50  ;;  %v842_v15 = vsel %vm617_vm5, %v837_v10, 0 }
 0x396   : > { %v1378_v63 = vmul.f32 1.442695, %v1377_v61 }
 0x397   : > { %v727_v53 = vpop.permute.xlu0 %726 }
 0x398   : > { %v732_v56 = vsel %vm617_vm5, %v727_v53, 0  ;;  %2055 = vpow2.f32 %v1378_v63 }
 0x39a   : > { %1056 = vrot.lane.b32.xlu0 %v2698_v48, %s2317_s27  ;;  %v2048_v51 = vpop.eup %2047  ;;  %s1735_s27 = sshll.u32 %s2295_s24, 7  ;;  %s2328_s24 = smov [#allocation13]  }
 0x39b   : > { %v612_v54 = vmul.f32 %v2048_v51, %v2040_v23  ;;  %v2050_v1 = vpop.eup %2049 }
 0x39c   : > { %v1050_v2 = vsel %vm601_vm4, %v2050_v1, 0.0  ;;  %v2052_v3 = vpop.eup %2051 }
 0x39d   : > { %v613_v55 = vpack.c.bf16 %v612_v54, %v612_v54  ;;  %v2745_v4 = vpop.eup %2053  ;;  %v1160_v5 = vsel %vm601_vm4, %v2052_v3, 0.0 }
 0x39e   : > { %v1270_v8 = vsel %vm601_vm4, %v2745_v4, 0.0 }
 0x39f   : > { %1815 = vmatmul.mubr.msk.bf16.vlgmr.msra.gmra.mrb[8].mxu0 %vm601_vm4, %v613_v55 }
 0x3a0   : > { %1825 = vmatpush3.bf16.msra.mxu0 %v732_v56  ;;  %1826 = vmatprep.mubr.msk.bf16.mxu0 %vm2313_vm1, %v2312_v0 }
 0x3a1   : > { %1836 = vmatprep.subr.bf16.mxu0 %v2312_v0 }
 0x3a2   : > { %v2748_v6 = vpop.eup %2055 }
 0x3a3   : > { %v1380_v7 = vsel %vm601_vm4, %v2748_v6, 0.0 }
 0x3b1   : > { %1051 = vadd.xlane.f32.xlu1 %v1050_v2 }
 0x3b5   : > { %1161 = vadd.xlane.f32.xlu1 %v1160_v5 }
 0x3b9   : > { %1381 = vadd.xlane.f32.xlu1 %v1380_v7  ;;  %1271 = vadd.xlane.f32.xlu0 %v1270_v8 }
 0x3ca   : > { %1166 = vrot.lane.b32.xlu1 %v2698_v48, %s2318_s13  ;;  %s365_s13 = scalar_lea.vmem [#allocation13], %s1699_s15  ;;  %s2217_s15 = sshll.u32 %s2328_s24, 4  ;;  %s2218_s15 = int_to_ptr.vmem [resolvable:$false] %s2217_s15 }
 0x3cf   : > { %1276 = vrot.lane.b32.xlu0 %v2698_v48, %s2319_s9  ;;  %s1564_s9 = sshll.u32 %s365_s13, 4  ;;  %s2811_s9 = int_to_ptr.vmem [resolvable:$true] %s1564_s9 }
 0x3d0   : > { %p2220_p0 = scmp.lt.s32.totalorder %s2811_s9, %s2218_s15 }
 0x3d3   : > { %1386 = vrot.lane.b32.xlu0 %v2698_v48, %s2320_s11 }
 0x401   : > { %v721_v9 = vpop.xlane.xlu0 %720 }
 0x402   : > { %2057 = vrcp.f32 %v721_v9 }
 0x409   : > { %v832_v11 = vpop.xlane.xlu1 %831 }
 0x40a   : > { %2059 = vrcp.f32 %v832_v11  ;;  %v2038_v11 = vld [vmem:[#allocation12 + $0x8] sm:$0xff]  }
 0x40c   : > { %v2058_v12 = vpop.eup %2057 }
 0x40d   : > { %v723_v13 = vmul.f32 %v2058_v12, %v2721_v36  ;;  %v947_v18 = vpop.permute.xlu1 %946 }
 0x40e   : > { %v952_v20 = vsel %vm617_vm5, %v947_v18, 0 }
 0x40f   : > { %v724_v14 = vpack.c.bf16 %v723_v13, %v723_v13 }
 0x411   : > { %v942_v16 = vpop.xlane.xlu0 %941  ;;  %1827 = vmatmul.mubr.msk.bf16.vlgmr.msra.gmra.mrb[12].mxu0 %vm601_vm4, %v724_v14 }
 0x412   : > { %2061 = vrcp.f32 %v942_v16  ;;  %1837 = vmatpush3.bf16.msra.mxu0 %v842_v15  ;;  %1838 = vmatprep.mubr.msk.bf16.mxu0 %vm2313_vm1, %v2312_v0 }
 0x413   : > { %1848 = vmatprep.subr.bf16.mxu0 %v2312_v0 }
 0x414   : > { %v2060_v48 = vpop.eup %2059 }
 0x415   : > { %v834_v17 = vmul.f32 %v2060_v48, %v2725_v41  ;;  %v1057_v23 = vpop.permute.xlu0 %1056 }
 0x416   : > { %v1062_v25 = vsel %vm617_vm5, %v1057_v23, 0 }
 0x417   : > { %v835_v19 = vpack.c.bf16 %v834_v17, %v834_v17 }
 0x419   : > { %1839 = vmatmul.mubr.msk.bf16.vlgmr.msra.gmra.mrb[16].mxu0 %vm601_vm4, %v835_v19 }
 0x41a   : > { %1849 = vmatpush3.bf16.msra.mxu0 %v952_v20  ;;  %1850 = vmatprep.mubr.msk.bf16.mxu0 %vm2313_vm1, %v2312_v0 }
 0x41b   : > { %1860 = vmatprep.subr.bf16.mxu0 %v2312_v0 }
 0x41c   : > { %v2062_v21 = vpop.eup %2061 }
 0x41d   : > { %v944_v22 = vmul.f32 %v2062_v21, %v2729_v43 }
 0x41f   : > { %v945_v24 = vpack.c.bf16 %v944_v22, %v944_v22 }
 0x421   : > { %1851 = vmatmul.mubr.msk.bf16.vlgmr.msra.gmra.mrb[20].mxu0 %vm601_vm4, %v945_v24 }
 0x422   : > { %1861 = vmatpush3.bf16.msra.mxu0 %v1062_v25  ;;  %1862 = vmatprep.mubr.msk.bf16.mxu0 %vm2313_vm1, %v2312_v0 }
 0x423   : > { %1872 = vmatprep.subr.bf16.mxu0 %v2312_v0 }
 0x43e   : > { %v1052_v26 = vpop.xlane.xlu1 %1051 }
 0x43f   : > { %2063 = vrcp.f32 %v1052_v26 }
 0x442   : > { %v1162_v27 = vpop.xlane.xlu1 %1161 }
 0x443   : > { %2065 = vrcp.f32 %v1162_v27 }
 0x446   : > { %v1382_v28 = vpop.xlane.xlu1 %1381  ;;  %v1272_v29 = vpop.xlane.xlu0 %1271 }
 0x447   : > { %2067 = vrcp.f32 %v1272_v29 }
 0x448   : > { %2069 = vrcp.f32 %v1382_v28 }
 0x449   : > { %v2064_v30 = vpop.eup %2063 }
 0x44a   : > { %v1054_v31 = vmul.f32 %v2064_v30, %v2050_v1  ;;  %v1167_v32 = vpop.permute.xlu1 %1166  ;;  %v1277_v37 = vpop.permute.xlu0 %1276 }
 0x44b   : > { %v1172_v35 = vsel %vm617_vm5, %v1167_v32, 0  ;;  %v1282_v40 = vsel %vm617_vm5, %v1277_v37, 0 }
 0x44c   : > { %v1055_v33 = vpack.c.bf16 %v1054_v31, %v1054_v31 }
 0x44d   : > { %v2066_v34 = vpop.eup %2065 }
 0x44e   : > { %1863 = vmatmul.mubr.msk.bf16.vlgmr.msra.gmra.mrb[24].mxu0 %vm601_vm4, %v1055_v33  ;;  %v1164_v36 = vmul.f32 %v2066_v34, %v2052_v3  ;;  %v1387_v42 = vpop.permute.xlu0 %1386  ;;  %v1474_v33 = vld [vmem:[#allocation3] sm:$0xff] }
 0x44f   : > { %1873 = vmatpush3.bf16.msra.mxu0 %v1172_v35  ;;  %1874 = vmatprep.mubr.msk.bf16.mxu0 %vm2313_vm1, %v2312_v0  ;;  %v1392_v45 = vsel %vm617_vm5, %v1387_v42, 0 }
 0x450   : > { %1884 = vmatprep.subr.bf16.mxu0 %v2312_v0  ;;  %v1165_v38 = vpack.c.bf16 %v1164_v36, %v1164_v36 }
 0x451   : > { %v2068_v39 = vpop.eup %2067 }
 0x452   : > { %v1274_v41 = vmul.f32 %v2068_v39, %v2745_v4  ;;  %v2070_v44 = vpop.eup %2069  ;;  %v1733_v39 = vld [vmem:[%s2864_s5] ss:$0 sm:$0xff] }
 0x453   : > { %v1384_v46 = vmul.f32 %v2070_v44, %v2748_v6  ;;  %v2037_v6 = vld [vmem:[#allocation12] sm:$0xff]  }
 0x454   : > { %v1275_v43 = vpack.c.bf16 %v1274_v41, %v1274_v41  ;;  %1903 = vmatpush3.bf16.msra.mxu1 %v2037_v6 }
 0x455   : > { %v1385_v47 = vpack.c.bf16 %v1384_v46, %v1384_v46  ;;  %1904 = vmatprep.subr.bf16.mxu1 %v2312_v0 }
 0x456   : > { %1875 = vmatmul.mubr.msk.bf16.vlgmr.msra.gmra.mrb[28].mxu0 %vm601_vm4, %v1165_v38 }
 0x457   : > { %1885 = vmatpush3.bf16.msra.mxu0 %v1282_v40  ;;  %1886 = vmatprep.mubr.msk.bf16.mxu0 %vm2313_vm1, %v2312_v0 }
 0x458   : > { %1896 = vmatprep.subr.bf16.mxu0 %v2312_v0  ;;  %1905 = vmatpush3.bf16.msra.mxu1 %v2038_v11 }
 0x45e   : > { %1887 = vmatmul.mubr.msk.bf16.vlgmr.msra.gmra.mrb[32].mxu0 %vm601_vm4, %v1275_v43 }
 0x45f   : > { %1897 = vmatpush3.bf16.msra.mxu0 %v1392_v45  ;;  %1898 = vmatprep.mubr.msk.bf16.mxu0 %vm2313_vm1, %v2312_v0 }
 0x466   : > { %1899 = vmatmul.mubr.msk.bf16.vlgmr.msra.gmra.mrb[36].mxu0 %vm601_vm4, %v1385_v47 }
 0x472   : > { %v655_v49 = vpop.f32.mrb[8].mxu0 }
 0x473   : > { %v1816_v50 = vpop.f32.mrb[9].mxu0 }
 0x474   : > { %v658_v51 = vpop.f32.mrb[10].mxu0 }
 0x475   : > { %v1817_v52 = vpop.f32.mrb[11].mxu0 }
 0x4e4   : > { %v768_v53 = vpop.f32.mrb[12].mxu0 }
 0x4e5   : > { %1435 = vrot.lane.b32.xlu1 %v768_v53, %s2321_s20  ;;  %v1828_v54 = vpop.f32.mrb[13].mxu0 }
 0x4e6   : > { %v771_v55 = vpop.f32.mrb[14].mxu0 }
 0x4e7   : > { %v1829_v56 = vpop.f32.mrb[15].mxu0 }
 0x4ec   : > { %v878_v57 = vpop.f32.mrb[16].mxu0 }
 0x4ed   : > { %1439 = vrot.lane.b32.xlu0 %v878_v57, %s2322_s8  ;;  %v1840_v58 = vpop.f32.mrb[17].mxu0  ;;  %s2809_s8 = scalar_lea.hbm %s2865_s6, %s1735_s27 }
 0x4ee   : > { %v881_v59 = vpop.f32.mrb[18].mxu0 }
 0x4ef   : > { %v1841_v60 = vpop.f32.mrb[19].mxu0 }
 0x4f4   : > { %v988_v61 = vpop.f32.mrb[20].mxu0 }
 0x4f5   : > { %1443 = vrot.lane.b32.xlu1 %v988_v61, %s2323_s30  ;;  %v1852_v62 = vpop.f32.mrb[21].mxu0  ;;  %s1551_s30 = scalar_lea.sflag [#allocation6], %s2602_s1 }
 0x4f6   : > { %v991_v63 = vpop.f32.mrb[22].mxu0 }
 0x4f7   : > { %v1853_v1 = vpop.f32.mrb[23].mxu0 }
 0x521   : > { %v1098_v2 = vpop.f32.mrb[24].mxu0 }
 0x522   : > { %1447 = vrot.lane.b32.xlu0 %v1098_v2, %s2324_s7  ;;  %v1864_v3 = vpop.f32.mrb[25].mxu0  ;;  %s2213_s7 = scalar_lea.vmem %s2811_s9, 128 }
 0x523   : > { %v1101_v4 = vpop.f32.mrb[26].mxu0  ;;  %p2214_p2 = scmp.ne.s32.totalorder %s2811_s9, %s2213_s7 }
 0x524   : > { %v1865_v5 = vpop.f32.mrb[27].mxu0 }
 0x525   : > { %p2215_p10 = pnand %p2214_p2, %p2886_p9 }
 0x527   : > { %p2216_p1 = pneg %p2215_p10 }
 0x529   : > { %v1208_v7 = vpop.f32.mrb[28].mxu0 }
 0x52a   : > { %1451 = vrot.lane.b32.xlu1 %v1208_v7, %s2325_s12  ;;  %v1876_v8 = vpop.f32.mrb[29].mxu0  ;;  %s2219_s12 = scalar_lea.vmem %s2218_s15, 256 }
 0x52b   : > { %v1211_v9 = vpop.f32.mrb[30].mxu0  ;;  %p2221_p7 = scmp.lt.s32.totalorder %s2219_s12, %s2213_s7 }
 0x52c   : > { %v1877_v10 = vpop.f32.mrb[31].mxu0 }
 0x52d   : > { %p2222_p5 = por %p2221_p7, %p2220_p0 }
 0x52f   : > { %p2223_p8 = pnand %p2222_p5, %p2216_p1 }
 0x531   : > { %v1318_v12 = vpop.f32.mrb[32].mxu0 }
 0x532   : > { %1455 = vrot.lane.b32.xlu0 %v1318_v12, %s2326_s10  ;;  %v1888_v13 = vpop.f32.mrb[33].mxu0 }
 0x533   : > { %v1321_v14 = vpop.f32.mrb[34].mxu0 }
 0x534   : > { %v1889_v15 = vpop.f32.mrb[35].mxu0 }
 0x539   : > { %v1428_v16 = vpop.f32.mrb[36].mxu0 }
 0x53a   : > { %1459 = vrot.lane.b32.xlu1 %v1428_v16, %s2327_s28  ;;  %v1900_v48 = vpop.f32.mrb[37].mxu0 }
 0x53b   : > { %v1431_v17 = vpop.f32.mrb[38].mxu0 }
 0x53c   : > { %v1901_v0 = vpop.f32.mrb[39].mxu0 }
 0x557   : > { %v1436_v18 = vpop.permute.xlu1 %1435 }
 0x558   : > { %v1462_v22 = vsel %vm554_vm3, %v655_v49, %v1436_v18 }
 0x55f   : > { %v1440_v19 = vpop.permute.xlu0 %1439 }
 0x560   : > { %v1463_v23 = vsel %vm601_vm4, %v1462_v22, %v1440_v19 }
 0x567   : > { %v1444_v20 = vpop.permute.xlu1 %1443 }
 0x568   : > { %v1465_v25 = vsel %vm1464_vm6, %v1463_v23, %v1444_v20 }
 0x594   : > { %v1448_v21 = vpop.permute.xlu0 %1447 }
 0x595   : > { %v1467_v27 = vsel %vm1466_vm7, %v1465_v25, %v1448_v21 }
 0x59c   : > { %v1452_v24 = vpop.permute.xlu1 %1451 }
 0x59d   : > { %v1469_v28 = vsel %vm1468_vm8, %v1467_v27, %v1452_v24 }
 0x5a4   : > { %v1456_v26 = vpop.permute.xlu0 %1455 }
 0x5a5   : > { %v1471_v29 = vsel %vm1470_vm9, %v1469_v28, %v1456_v26 }
 0x5ac   : > { %v1460_v30 = vpop.permute.xlu1 %1459 }
 0x5ad   : > { %v1473_v31 = vsel %vm1472_vm10, %v1471_v29, %v1460_v30 }
 0x5ae   : > { %v1475_v32 = vpack.c.bf16 %v1473_v31, %v1473_v31 }
 0x5b0   : > { %1907 = vmatmul.mubr.msk.bf16.vlgmr.msra.gmra.mrb[36].mxu1 %vm376_vm0, %v1475_v32 }
 0x683   : > { %v1529_v34 = vpop.f32.mrb[36].mxu1 }
 0x684   : > { %v1535_v35 = vadd.f32 %v1529_v34, %v1474_v33  ;;  %v1908_v36 = vpop.f32.mrb[37].mxu1 }
 0x685   : > { %v1532_v37 = vpop.f32.mrb[38].mxu1 }
 0x686   : > { %1536 = vst.msk [vmem:[#allocation3] sm:$0xff] %vm376_vm0, %v1535_v35  ;;  %v1909_v38 = vpop.f32.mrb[39].mxu1 }
 0x68d   : > { %v1540_v40 = vld [vmem:[#allocation3] sm:$0xff] }
 0x68e   : > { %v1548_v41 = vadd.f32 %v1733_v39, %v1540_v40 }
 0x690   : > { %1549 = vst.msk [vmem:[%s365_s13] sm:$0xff] %vm376_vm0, %v1548_v41 }
 0x691   : > { %2226 = shalt.err (!%p2223_p8)
}
 0x692   : > { %s2227_s1 = scalar_lea.hbm %s2809_s8, 128  ;;  %s2231_s29 = scalar_lea.hbm %s2865_s6, 256 }
 0x693   : > { %p2228_p3 = scmp.ne.s32.totalorder %s2809_s8, %s2227_s1  ;;  %p2232_p13 = scmp.lt.u32.totalorder %s2809_s8, %s2865_s6 }
 0x694   : > { %p2233_p12 = scmp.lt.u32.totalorder %s2231_s29, %s2227_s1  ;;  %p2235_p2 = scmp.lt.u32.totalorder %s2227_s1, %s2809_s8 }
 0x695   : > { %p2229_p11 = pnand %p2228_p3, %p2886_p9 }
 0x696   : > { %p2234_p4 = por %p2233_p12, %p2232_p13 }
 0x697   : > { %p2230_p6 = pneg %p2229_p11 }
 0x698   : > { %p2236_p10 = por %p2235_p2, %p2234_p4 }
 0x69a   : > { %p2237_p1 = pnand %p2236_p10, %p2230_p6 }
 0x69c   : > { %2240 = shalt.err (!%p2237_p1)
}
 0x69d   : > { %1928 = dma.vmem_to_hbm [thread:$0]  (%p2886_p9), %s2811_s9, 128, %s2809_s8, %s1551_s30  }
 0x69e PF: > { %s1576_s13 = sand.u32 1, %s2283_s21   ;;  %p2887_p0 = scmp.ne.s32.totalorder %s2882_s19, 0 }
 0x69f   : > { %p2888_p7 = scmp.ge.s32.totalorder %s2303_s26, 2  ;;  %s1577_s11 = scalar_lea.sflag [#allocation6], %s1576_s13 }
 0x6a1   : > { %p1948_p5 = pnand %p2888_p7, %p2887_p0 }
 0x6a3   : > { %2278 = dma.done.wait (!%p1948_p5), %s1577_s11, 128  }
 0x6a4   : > { %2280 = vsyncadd (!%p1948_p5), %s1577_s11, 4294967168  ;;  %s24_s26 = sadd.s32 1, %s2303_s26   ;;  %s2889_s21 = smov %s2287_s22 }
 0x6a5   : > { %p21_p8 = scmp.ge.s32.totalorder %s24_s26, 4   ;;  %s2890_s22 = smov %s2291_s23 }
 0x6a6   : > { %s2891_s23 = smov %s2552_s17  ;;  %s2892_s24 = smov %s2299_s25 }
 0x6a7   : > { %s2893_s25 = smov %s2895_s18  ;;  %23 = sbr.rel (!%p21_p8) target bundleno = 10 (0xa), region = 117 }
 0x6ae   :  { %1582 = vsyncpa [#allocation5], 1 }
 0x6af   :  { %1584 = vsyncpa [#allocation5 + $0x1], 1 }
 0x6b0   :  { %1585 = vsyncpa [#allocation8], 1 }
 0x6b1   :  { %1586 = vsyncpa [#allocation11], 1 }
 0x6b2   :  { %1587 = vsyncpa [#allocation6], 1 }
 0x6b3   :  { %1589 = vsyncpa [#allocation6 + $0x1], 1 }

</bundles_post_ra>
